<compile_context>
chip_gen: v5e
topology: v5e:2x2
jax: 0.10.0
libtpu: 0.0.40
codegen_flags: <defaults>
</compile_context>

<pallas_src>
import functools

import jax
import jax.numpy as jnp
from jax.experimental import pallas as pl
from jax.experimental.pallas import tpu as pltpu

HIDDEN_SIZE = 50
INPUT_SIZE = 32 * 32 * 3   # 3072
OUTPUT_SIZE = 10

HIDDEN_PAD = 128           # 50 -> 128 lanes (zero-padded, numerically exact)
OUT_PAD = 128              # 10 -> 128 lanes => unmasked lane-dense stores


def _round_up(n, m):
    return ((n + m - 1) // m) * m


def _per_generation_defaults():
    """Pick (batch_tile, vmem_limit_bytes) from the chip's VMEM capacity.
    128 MiB parts (v5e/v6e): TB=2048 under a ~100 MiB limit (double-buffered
    f32 x stream ~48 MiB).  64 MiB parts (v7x): TB=1024 under a 48 MiB limit
    (~28 MiB used).  Conservative (v7x) numbers if the query is unavailable."""
    try:
        vmem = pltpu.get_tpu_info().vmem_capacity_bytes
    except Exception:
        vmem = 64 * 1024 * 1024
    if vmem >= 96 * 1024 * 1024:
        return 2048, 100 * 1024 * 1024
    return 1024, 48 * 1024 * 1024


_DEFAULT_TB, _VMEM_LIMIT_BYTES = _per_generation_defaults()


def _pick_batch_tile(batch, tb_target):
    """Choose the batch tile: aim for >=4 grid steps (pipeline overlap + v7x
    megacore sharding) while keeping block rows a multiple of 8 and <= batch,
    so only the LAST block is partial (standard masked-tail case)."""
    if batch <= 8:
        return batch                        # block rows == full array dim
    if batch < 4 * tb_target:
        cand = max(64, _round_up(-(-batch // 4), 8))   # ~batch/4, >=64 rows
    else:
        cand = tb_target
    cand = min(cand, tb_target)
    return min(cand, (batch // 8) * 8)


def mlp_kernel(x_ref, w1_ref, b1_ref, w2_ref, b2_ref, o_ref):
    # VMEM-only cast to the MXU streaming dtype (no extra HBM traffic).
    # With f32 weights this is a no-op and the path has exact f32 semantics.
    x = x_ref[...].astype(w1_ref.dtype)
    # fc1: [TB, 3072] @ [3072, 128], f32 accumulation on the MXU.
    h = jnp.dot(x, w1_ref[...], preferred_element_type=jnp.float32)
    h = jnp.maximum(h + b1_ref[...], 0.0)                     # bias + ReLU, f32
    # fc2: [TB, 128] @ [128, 128], f32 accumulation.
    o = jnp.dot(h.astype(w2_ref.dtype), w2_ref[...],
                preferred_element_type=jnp.float32)
    # Rows are independent. Tail-block rows beyond B are garbage; the partial
    # output block is masked on writeback and sliced off in the wrapper.
    # Do NOT add any reduction over the batch dim here without masking.
    o_ref[...] = (o + b2_ref[...]).astype(o_ref.dtype)


def prepare_params(w1, b1, w2, b2, dtype=jnp.bfloat16):
    """One-time prep: transpose PyTorch [out,in] weights to [in,out], zero-pad
    hidden (50->128) and output (10->128) lanes, and cast weights to the MXU
    dtype. Zero padding is exact: padded hidden units get bias 0 -> ReLU 0 ->
    contribute 0 through zero w2 rows; padded output columns are sliced away.
    Biases stay f32 (applied after the f32 accumulation).
    dtype=float32 -> exact module math; bf16 (default) -> fast, HBM-bound."""
    w1t = jnp.zeros((INPUT_SIZE, HIDDEN_PAD), dtype)
    w1t = w1t.at[:, :HIDDEN_SIZE].set(w1.T.astype(dtype))
    b1p = jnp.zeros((1, HIDDEN_PAD), jnp.float32)
    b1p = b1p.at[:, :HIDDEN_SIZE].set(b1.astype(jnp.float32))
    w2t = jnp.zeros((HIDDEN_PAD, OUT_PAD), dtype)
    w2t = w2t.at[:HIDDEN_SIZE, :OUTPUT_SIZE].set(w2.T.astype(dtype))
    b2p = jnp.zeros((1, OUT_PAD), jnp.float32)
    b2p = b2p.at[:, :OUTPUT_SIZE].set(b2.astype(jnp.float32))
    return w1t, b1p, w2t, b2p


@functools.partial(jax.jit, static_argnames=("tb",))
def net_forward(x, params, *, tb=None):
    """x: [B, 3, 32, 32] (NCHW), f32 or bf16. params: from prepare_params.
    Returns [B, 10] float32."""
    w1t, b1p, w2t, b2p = params
    B = x.shape[0]
    # Flatten only (row-major, same ordering as torch .view). No pad and no
    # dtype cast here: both would round-trip the whole activation through HBM.
    xf = x.reshape(B, -1)
    assert xf.shape[1] == INPUT_SIZE

    tb_target = tb if tb is not None else _DEFAULT_TB
    tb_eff = _pick_batch_tile(B, tb_target)
    grid = (pl.cdiv(B, tb_eff),)

    cost = pl.CostEstimate(
        flops=2 * B * INPUT_SIZE * HIDDEN_PAD + 2 * B * HIDDEN_PAD * OUT_PAD,
        transcendentals=0,
        bytes_accessed=(xf.size * xf.dtype.itemsize          # stream x once
                        + w1t.size * w1t.dtype.itemsize      # w1 (resident)
                        + w2t.size * w2t.dtype.itemsize      # w2 (resident)
                        + B * OUT_PAD * 4),                  # output
    )

    out_pad = pl.pallas_call(
        mlp_kernel,
        out_shape=jax.ShapeDtypeStruct((B, OUT_PAD), jnp.float32),
        grid=grid,
        in_specs=[
            pl.BlockSpec((tb_eff, INPUT_SIZE), lambda i: (i, 0)),      # streamed
            pl.BlockSpec((INPUT_SIZE, HIDDEN_PAD), lambda i: (0, 0)),  # resident
            pl.BlockSpec((1, HIDDEN_PAD), lambda i: (0, 0)),           # resident
            pl.BlockSpec((HIDDEN_PAD, OUT_PAD), lambda i: (0, 0)),     # resident
            pl.BlockSpec((1, OUT_PAD), lambda i: (0, 0)),              # resident
        ],
        out_specs=pl.BlockSpec((tb_eff, OUT_PAD), lambda i: (i, 0)),
        compiler_params=pltpu.CompilerParams(
            dimension_semantics=("parallel",),   # megacore-shard batch (v7x)
            vmem_limit_bytes=_VMEM_LIMIT_BYTES,
        ),
        cost_estimate=cost,
    )(xf, w1t, b1p, w2t, b2p)

    return out_pad[:B, :OUTPUT_SIZE]


def init_params(key):
    """Mirrors the PyTorch module: kaiming_normal_ weights, default-style biases."""
    k1, k2, k3, k4 = jax.random.split(key, 4)
    std1 = (2.0 / INPUT_SIZE) ** 0.5
    std2 = (2.0 / HIDDEN_SIZE) ** 0.5
    w1 = std1 * jax.random.normal(k1, (HIDDEN_SIZE, INPUT_SIZE), jnp.float32)
    w2 = std2 * jax.random.normal(k2, (OUTPUT_SIZE, HIDDEN_SIZE), jnp.float32)
    bound1 = 1.0 / (INPUT_SIZE ** 0.5)
    bound2 = 1.0 / (HIDDEN_SIZE ** 0.5)
    b1 = jax.random.uniform(k3, (HIDDEN_SIZE,), jnp.float32, -bound1, bound1)
    b2 = jax.random.uniform(k4, (OUTPUT_SIZE,), jnp.float32, -bound2, bound2)
    return w1, b1, w2, b2


if __name__ == "__main__":
    key = jax.random.PRNGKey(0)
    kx, kp = jax.random.split(key)

    # Small CIFAR-shaped batch (NCHW) matching input_size = 32*32*3.
    x = jax.random.normal(kx, (2, 3, 32, 32), jnp.float32)
    w1, b1, w2, b2 = init_params(kp)

    # Pure-JAX reference (exact module semantics).
    xf = x.reshape(x.shape[0], -1)
    ref = jnp.maximum(xf @ w1.T + b1, 0.0) @ w2.T + b2

    # Exact-semantics path: f32 weights -> f32 MXU math.
    params_f32 = prepare_params(w1, b1, w2, b2, dtype=jnp.float32)
    out = jax.block_until_ready(net_forward(x, params_f32))
    assert out.shape == (2, OUTPUT_SIZE)
    assert jnp.allclose(out, ref, atol=1e-4, rtol=1e-4)

    # Default fast path: bf16 MXU inputs (x cast in-kernel, no HBM copy),
    # f32 accumulation. Inference-grade accuracy (~1e-2 relative).
    params_bf16 = prepare_params(w1, b1, w2, b2)
    out_bf16 = jax.block_until_ready(net_forward(x, params_bf16))
    assert out_bf16.shape == (2, OUTPUT_SIZE)
    assert jnp.allclose(out_bf16, ref, atol=1e-1, rtol=1e-1)

    print("KERNEL_OK")
</pallas_src>

<mosaic_0001>
module attributes {stable_mosaic.version = 11 : i64} {
  func.func @mlp_kernel(%arg0: i32, %arg1: memref<2x3072xf32, #tpu.memory_space<vmem>>, %arg2: memref<3072x128xf32, #tpu.memory_space<vmem>>, %arg3: memref<1x128xf32, #tpu.memory_space<vmem>>, %arg4: memref<128x128xf32, #tpu.memory_space<vmem>>, %arg5: memref<1x128xf32, #tpu.memory_space<vmem>>, %arg6: memref<2x128xf32, #tpu.memory_space<vmem>>) attributes {dimension_semantics = [#tpu.dimension_semantics<parallel>], iteration_bounds = array<i64: 1>, scalar_prefetch = 0 : i64, scratch_operands = 0 : i64, tpu.core_type = #tpu.core_type<tc>, window_params = [{transform_indices = @transform_0, window_bounds = array<i64: 2, 3072>}, {pipeline_mode = #tpu.pipeline_mode<synchronous>, transform_indices = @transform_1, window_bounds = array<i64: 3072, 128>}, {pipeline_mode = #tpu.pipeline_mode<synchronous>, transform_indices = @transform_2, window_bounds = array<i64: 1, 128>}, {pipeline_mode = #tpu.pipeline_mode<synchronous>, transform_indices = @transform_3, window_bounds = array<i64: 128, 128>}, {pipeline_mode = #tpu.pipeline_mode<synchronous>, transform_indices = @transform_4, window_bounds = array<i64: 1, 128>}, {transform_indices = @transform_5, window_bounds = array<i64: 2, 128>}]} {
    %c0 = arith.constant 0 : index
    %c0_0 = arith.constant 0 : index
    %0 = vector.load %arg1[%c0, %c0_0] : memref<2x3072xf32, #tpu.memory_space<vmem>>, vector<2x3072xf32>
    %c0_1 = arith.constant 0 : index
    %c0_2 = arith.constant 0 : index
    %1 = vector.load %arg2[%c0_1, %c0_2] : memref<3072x128xf32, #tpu.memory_space<vmem>>, vector<3072x128xf32>
    %cst = arith.constant dense<0.000000e+00> : vector<2x128xf32>
    %2 = tpu.matmul %0, %1, %cst {dimension_numbers = #tpu.dot_dimension_numbers<[1], [0], [0], [1], [0, 0, 1, 1], [], []>} : vector<2x3072xf32>, vector<3072x128xf32>, vector<2x128xf32> -> vector<2x128xf32>
    %c0_3 = arith.constant 0 : index
    %c0_4 = arith.constant 0 : index
    %3 = vector.load %arg3[%c0_3, %c0_4] : memref<1x128xf32, #tpu.memory_space<vmem>>, vector<1x128xf32>
    %4 = vector.broadcast %3 : vector<1x128xf32> to vector<2x128xf32>
    %5 = arith.addf %2, %4 : vector<2x128xf32>
    %cst_5 = arith.constant 0.000000e+00 : f32
    %6 = vector.broadcast %cst_5 : f32 to vector<2x128xf32>
    %7 = arith.maximumf %5, %6 : vector<2x128xf32>
    %c0_6 = arith.constant 0 : index
    %c0_7 = arith.constant 0 : index
    %8 = vector.load %arg4[%c0_6, %c0_7] : memref<128x128xf32, #tpu.memory_space<vmem>>, vector<128x128xf32>
    %cst_8 = arith.constant dense<0.000000e+00> : vector<2x128xf32>
    %9 = tpu.matmul %7, %8, %cst_8 {dimension_numbers = #tpu.dot_dimension_numbers<[1], [0], [0], [1], [0, 0, 1, 1], [], []>} : vector<2x128xf32>, vector<128x128xf32>, vector<2x128xf32> -> vector<2x128xf32>
    %c0_9 = arith.constant 0 : index
    %c0_10 = arith.constant 0 : index
    %10 = vector.load %arg5[%c0_9, %c0_10] : memref<1x128xf32, #tpu.memory_space<vmem>>, vector<1x128xf32>
    %11 = vector.broadcast %10 : vector<1x128xf32> to vector<2x128xf32>
    %12 = arith.addf %9, %11 : vector<2x128xf32>
    %c0_11 = arith.constant 0 : index
    %c0_12 = arith.constant 0 : index
    %13 = vector.load %arg6[%c0_11, %c0_12] : memref<2x128xf32, #tpu.memory_space<vmem>>, vector<2x128xf32>
    tpu.vector_store %arg6[%c0_11, %c0_12], %12 {strides = array<i32>} : memref<2x128xf32, #tpu.memory_space<vmem>>, vector<2x128xf32>,
    return
  }
  func.func @transform_0(%arg0: i32) -> (i32, i32) {
    %c0_i32 = arith.constant 0 : i32
    %c0_i32_0 = arith.constant 0 : i32
    return %arg0, %c0_i32 : i32, i32
  }
  func.func @transform_1(%arg0: i32) -> (i32, i32) {
    %c0_i32 = arith.constant 0 : i32
    %c0_i32_0 = arith.constant 0 : i32
    %c0_i32_1 = arith.constant 0 : i32
    return %c0_i32, %c0_i32_0 : i32, i32
  }
  func.func @transform_2(%arg0: i32) -> (i32, i32) {
    %c0_i32 = arith.constant 0 : i32
    %c0_i32_0 = arith.constant 0 : i32
    %c0_i32_1 = arith.constant 0 : i32
    return %c0_i32, %c0_i32_0 : i32, i32
  }
  func.func @transform_3(%arg0: i32) -> (i32, i32) {
    %c0_i32 = arith.constant 0 : i32
    %c0_i32_0 = arith.constant 0 : i32
    %c0_i32_1 = arith.constant 0 : i32
    return %c0_i32, %c0_i32_0 : i32, i32
  }
  func.func @transform_4(%arg0: i32) -> (i32, i32) {
    %c0_i32 = arith.constant 0 : i32
    %c0_i32_0 = arith.constant 0 : i32
    %c0_i32_1 = arith.constant 0 : i32
    return %c0_i32, %c0_i32_0 : i32, i32
  }
  func.func @transform_5(%arg0: i32) -> (i32, i32) {
    %c0_i32 = arith.constant 0 : i32
    %c0_i32_0 = arith.constant 0 : i32
    return %arg0, %c0_i32 : i32, i32
  }
}

</mosaic_0001>

<bundles_post_ra>
// kernel: net_forward.1
= control target key start
LH: loop header
LB: loop body
LE: loop exit
PB: predicated region body
PF: predicated region fallthrough
CT: control target
= control target key end

     0   :  { %10 = vsyncpa [#allocation3], 0  ;;  %s1325_s0 = inlined_call_operand.vmem [shape: f32[2,3072], index: 0, kind: input, shape index: {}]   ;;  %s1326_s1 = inlined_call_operand.hbm [shape: f32[3072,128], index: 1, kind: input, shape index: {}]   ;;  %s1327_s2 = inlined_call_operand.hbm [shape: f32[1,128], index: 2, kind: input, shape index: {}]   ;;  %s1328_s3 = inlined_call_operand.hbm [shape: f32[128,128], index: 3, kind: input, shape index: {}]   ;;  %s1329_s4 = inlined_call_operand.hbm [shape: f32[1,128], index: 4, kind: input, shape index: {}]   ;;  %s1330_s5 = inlined_call_operand.hbm [shape: f32[2,128], index: 5, kind: output, shape index: {}]  }
   0x1   :  { %11 = vsyncpa [#allocation6], 0 }
   0x2   :  { %12 = vsyncpa [#allocation9], 0  ;;  %s34_s20 = sshll.u32 %s1327_s2, 4  ;;  %s35_s20 = int_to_ptr.hbm [resolvable:$true] %s34_s20 }
   0x3   :  { %13 = vsyncpa [#allocation4], 0  ;;  %s1213_s21 = smov [#allocation5]   ;;  %s20_s25 = sshll.u32 %s1326_s1, 4  ;;  %s21_s25 = int_to_ptr.hbm [resolvable:$true] %s20_s25 }
   0x4   :  { %s36_s22 = sshll.u32 %s1213_s21, 4  ;;  %s1214_s26 = smov [#allocation2]   ;;  %s37_s22 = int_to_ptr.vmem [resolvable:$true] %s36_s22 }
   0x5   :  { %39 = dma.hbm_to_vmem [thread:$0]  %s35_s20, 16, %s37_s22, [#allocation6]  }
   0x6   :  { %s22_s27 = sshll.u32 %s1214_s26, 4  ;;  %s1215_s28 = smov 128   ;;  %s23_s27 = int_to_ptr.vmem [resolvable:$true] %s22_s27 }
   0x7   :  { %s1216_s29 = smov 8   ;;  %s44_s2 = sshll.u32 %s1328_s3, 4  ;;  %s45_s2 = int_to_ptr.hbm [resolvable:$true] %s44_s2 }
   0x8   :  { %28 = dma.hbm_to_vmem [thread:$0]  %s21_s25, 49152, %s23_s27, [#allocation3], %s1215_s28, %s1215_s28, %s1216_s29  }
   0x9   :  { %s1217_s7 = smov [#allocation7]   ;;  %s58_s1 = sshll.u32 %s1329_s4, 4  ;;  %s59_s1 = int_to_ptr.hbm [resolvable:$true] %s58_s1 }
   0xa   :  { %s46_s8 = sshll.u32 %s1217_s7, 4  ;;  %s1218_s11 = smov [#allocation8]   ;;  %s47_s8 = int_to_ptr.vmem [resolvable:$true] %s46_s8 }
   0xb   :  { %52 = dma.hbm_to_vmem [thread:$0]  %s45_s2, 2048, %s47_s8, [#allocation6], %s1215_s28, %s1215_s28, %s1216_s29  }
   0xc   :  { %s60_s12 = sshll.u32 %s1218_s11, 4  ;;  %s61_s12 = int_to_ptr.vmem [resolvable:$true] %s60_s12 }
   0xd   :  { %63 = dma.hbm_to_vmem [thread:$0]  %s59_s1, 16, %s61_s12, [#allocation9]  }
   0xe   :  { %1205 = dma.done.wait [#allocation3], 49152  }
   0xf   :  { %1206 = vsyncadd [#allocation3], 4294918144 }
  0x10   :  { %1207 = dma.done.wait [#allocation6], 2064  }
  0x11   :  { %1208 = vsyncadd [#allocation6], 4294965232 }
  0x12   :  { %1209 = dma.done.wait [#allocation9], 16  }
  0x13   :  { %1210 = vsyncadd [#allocation9], 4294967280  ;;  %v101_v0 = vld [vmem:[#allocation2 + $0x78] sm:$0xff]  ;;  %v100_v2 = vld [vmem:[#allocation2 + $0x70] sm:$0xff]  ;;  %s1064_s26 = sshll.u32 %s1330_s5, 4  ;;  %s1065_s26 = int_to_ptr.hbm [resolvable:$true] %s1064_s26 }
  0x14   :  { %v133_v1 = vld [vmem:[#allocation2 + $0x178] sm:$0xff]  ;;  %535 = vmatpush.msra.mxu0 %v101_v0  ;;  %v132_v4 = vld [vmem:[#allocation2 + $0x170] sm:$0xff]  ;;  %v99_v6 = vld [vmem:[#allocation2 + $0x68] sm:$0xff] }
  0x15   :  { %575 = vmatpush.msra.mxu2 %v133_v1  ;;  %v117_v3 = vld [vmem:[#allocation2 + $0xf8] sm:$0xff]  ;;  %v116_v7 = vld [vmem:[#allocation2 + $0xf0] sm:$0xff]  ;;  %v131_v8 = vld [vmem:[#allocation2 + $0x168] sm:$0xff] }
  0x16   :  { %v149_v5 = vld [vmem:[#allocation2 + $0x1f8] sm:$0xff]  ;;  %555 = vmatpush.msra.mxu1 %v117_v3  ;;  %536 = vmatpush.msra.mxu0 %v100_v2  ;;  %v148_v9 = vld [vmem:[#allocation2 + $0x1f0] sm:$0xff]  ;;  %v115_v10 = vld [vmem:[#allocation2 + $0xe8] sm:$0xff] }
  0x17   :  { %595 = vmatpush.msra.mxu3 %v149_v5  ;;  %576 = vmatpush.msra.mxu2 %v132_v4  ;;  %v98_v11 = vld [vmem:[#allocation2 + $0x60] sm:$0xff]  ;;  %v147_v13 = vld [vmem:[#allocation2 + $0x1e8] sm:$0xff]  ;;  %v97_v16 = vld [vmem:[#allocation2 + $0x58] sm:$0xff] }
  0x18   :  { %556 = vmatpush.msra.mxu1 %v116_v7  ;;  %v130_v12 = vld [vmem:[#allocation2 + $0x160] sm:$0xff]  ;;  %537 = vmatpush.msra.mxu0 %v99_v6  ;;  %v129_v17 = vld [vmem:[#allocation2 + $0x158] sm:$0xff]  ;;  %v96_v20 = vld [vmem:[#allocation2 + $0x50] sm:$0xff] }
  0x19   :  { %596 = vmatpush.msra.mxu3 %v148_v9  ;;  %577 = vmatpush.msra.mxu2 %v131_v8  ;;  %v114_v14 = vld [vmem:[#allocation2 + $0xe0] sm:$0xff]  ;;  %v113_v18 = vld [vmem:[#allocation2 + $0xd8] sm:$0xff]  ;;  %v128_v21 = vld [vmem:[#allocation2 + $0x150] sm:$0xff] }
  0x1a   :  { %v146_v15 = vld [vmem:[#allocation2 + $0x1e0] sm:$0xff]  ;;  %557 = vmatpush.msra.mxu1 %v115_v10  ;;  %538 = vmatpush.msra.mxu0 %v98_v11  ;;  %v145_v19 = vld [vmem:[#allocation2 + $0x1d8] sm:$0xff]  ;;  %v112_v22 = vld [vmem:[#allocation2 + $0xd0] sm:$0xff] }
  0x1b   :  { %597 = vmatpush.msra.mxu3 %v147_v13  ;;  %578 = vmatpush.msra.mxu2 %v130_v12  ;;  %v144_v23 = vld [vmem:[#allocation2 + $0x1d0] sm:$0xff]  ;;  %v95_v24 = vld [vmem:[#allocation2 + $0x48] sm:$0xff]  ;;  %v94_v28 = vld [vmem:[#allocation2 + $0x40] sm:$0xff] }
  0x1c   :  { %558 = vmatpush.msra.mxu1 %v114_v14  ;;  %539 = vmatpush.msra.mxu0 %v97_v16  ;;  %v127_v25 = vld [vmem:[#allocation2 + $0x148] sm:$0xff]  ;;  %v126_v29 = vld [vmem:[#allocation2 + $0x140] sm:$0xff]  ;;  %v93_v32 = vld [vmem:[#allocation2 + $0x38] sm:$0xff] }
  0x1d   :  { %598 = vmatpush.msra.mxu3 %v146_v15  ;;  %579 = vmatpush.msra.mxu2 %v129_v17  ;;  %v111_v26 = vld [vmem:[#allocation2 + $0xc8] sm:$0xff]  ;;  %v110_v30 = vld [vmem:[#allocation2 + $0xc0] sm:$0xff]  ;;  %v125_v33 = vld [vmem:[#allocation2 + $0x138] sm:$0xff] }
  0x1e   :  { %559 = vmatpush.msra.mxu1 %v113_v18  ;;  %540 = vmatpush.msra.mxu0 %v96_v20  ;;  %v143_v27 = vld [vmem:[#allocation2 + $0x1c8] sm:$0xff]  ;;  %v142_v31 = vld [vmem:[#allocation2 + $0x1c0] sm:$0xff]  ;;  %v109_v34 = vld [vmem:[#allocation2 + $0xb8] sm:$0xff] }
  0x1f   :  { %599 = vmatpush.msra.mxu3 %v145_v19  ;;  %580 = vmatpush.msra.mxu2 %v128_v21  ;;  %v141_v35 = vld [vmem:[#allocation2 + $0x1b8] sm:$0xff]  ;;  %v92_v36 = vld [vmem:[#allocation2 + $0x30] sm:$0xff]  ;;  %v91_v40 = vld [vmem:[#allocation2 + $0x28] sm:$0xff] }
  0x20   :  { %560 = vmatpush.msra.mxu1 %v112_v22  ;;  %541 = vmatpush.msra.mxu0 %v95_v24  ;;  %v124_v37 = vld [vmem:[#allocation2 + $0x130] sm:$0xff]  ;;  %v123_v41 = vld [vmem:[#allocation2 + $0x128] sm:$0xff]  ;;  %v90_v44 = vld [vmem:[#allocation2 + $0x20] sm:$0xff] }
  0x21   :  { %600 = vmatpush.msra.mxu3 %v144_v23  ;;  %581 = vmatpush.msra.mxu2 %v127_v25  ;;  %v108_v38 = vld [vmem:[#allocation2 + $0xb0] sm:$0xff]  ;;  %v107_v42 = vld [vmem:[#allocation2 + $0xa8] sm:$0xff]  ;;  %v122_v45 = vld [vmem:[#allocation2 + $0x120] sm:$0xff] }
  0x22   :  { %561 = vmatpush.msra.mxu1 %v111_v26  ;;  %542 = vmatpush.msra.mxu0 %v94_v28  ;;  %v140_v39 = vld [vmem:[#allocation2 + $0x1b0] sm:$0xff]  ;;  %v139_v43 = vld [vmem:[#allocation2 + $0x1a8] sm:$0xff]  ;;  %v106_v46 = vld [vmem:[#allocation2 + $0xa0] sm:$0xff] }
  0x23   :  { %601 = vmatpush.msra.mxu3 %v143_v27  ;;  %582 = vmatpush.msra.mxu2 %v126_v29  ;;  %v138_v47 = vld [vmem:[#allocation2 + $0x1a0] sm:$0xff]  ;;  %v89_v48 = vld [vmem:[#allocation2 + $0x18] sm:$0xff]  ;;  %v88_v52 = vld [vmem:[#allocation2 + $0x10] sm:$0xff] }
  0x24   :  { %562 = vmatpush.msra.mxu1 %v110_v30  ;;  %543 = vmatpush.msra.mxu0 %v93_v32  ;;  %v121_v49 = vld [vmem:[#allocation2 + $0x118] sm:$0xff]  ;;  %v120_v53 = vld [vmem:[#allocation2 + $0x110] sm:$0xff]  ;;  %v87_v56 = vld [vmem:[#allocation2 + $0x8] sm:$0xff] }
  0x25   :  { %602 = vmatpush.msra.mxu3 %v142_v31  ;;  %583 = vmatpush.msra.mxu2 %v125_v33  ;;  %v105_v50 = vld [vmem:[#allocation2 + $0x98] sm:$0xff]  ;;  %v104_v54 = vld [vmem:[#allocation2 + $0x90] sm:$0xff]  ;;  %v119_v57 = vld [vmem:[#allocation2 + $0x108] sm:$0xff] }
  0x26   :  { %563 = vmatpush.msra.mxu1 %v109_v34  ;;  %544 = vmatpush.msra.mxu0 %v92_v36  ;;  %v137_v51 = vld [vmem:[#allocation2 + $0x198] sm:$0xff]  ;;  %v136_v55 = vld [vmem:[#allocation2 + $0x190] sm:$0xff]  ;;  %v103_v58 = vld [vmem:[#allocation2 + $0x88] sm:$0xff] }
  0x27   :  { %603 = vmatpush.msra.mxu3 %v141_v35  ;;  %584 = vmatpush.msra.mxu2 %v124_v37  ;;  %v135_v59 = vld [vmem:[#allocation2 + $0x188] sm:$0xff]  ;;  %v86_v60 = vld [vmem:[#allocation2] sm:$0xff]  ;;  %v165_v62 = vld [vmem:[#allocation2 + $0x278] sm:$0xff] }
  0x28   :  { %564 = vmatpush.msra.mxu1 %v108_v38  ;;  %545 = vmatpush.msra.mxu0 %v91_v40  ;;  %v118_v61 = vld [vmem:[#allocation2 + $0x100] sm:$0xff]  ;;  %v197_v63 = vld [vmem:[#allocation2 + $0x378] sm:$0xff]  ;;  %v164_v2 = vld [vmem:[#allocation2 + $0x270] sm:$0xff] }
  0x29   :  { %604 = vmatpush.msra.mxu3 %v140_v39  ;;  %585 = vmatpush.msra.mxu2 %v123_v41  ;;  %v102_v0 = vld [vmem:[#allocation2 + $0x80] sm:$0xff]  ;;  %v181_v3 = vld [vmem:[#allocation2 + $0x2f8] sm:$0xff]  ;;  %v196_v4 = vld [vmem:[#allocation2 + $0x370] sm:$0xff] }
  0x2a   :  { %565 = vmatpush.msra.mxu1 %v107_v42  ;;  %546 = vmatpush.msra.mxu0 %v90_v44  ;;  %v134_v1 = vld [vmem:[#allocation2 + $0x180] sm:$0xff]  ;;  %v213_v5 = vld [vmem:[#allocation2 + $0x3f8] sm:$0xff]  ;;  %v163_v6 = vld [vmem:[#allocation2 + $0x268] sm:$0xff] }
  0x2b   :  { %605 = vmatpush.msra.mxu3 %v139_v43  ;;  %586 = vmatpush.msra.mxu2 %v122_v45  ;;  %v180_v7 = vld [vmem:[#allocation2 + $0x2f0] sm:$0xff]  ;;  %v195_v8 = vld [vmem:[#allocation2 + $0x368] sm:$0xff]  ;;  %v162_v10 = vld [vmem:[#allocation2 + $0x260] sm:$0xff] }
  0x2c   :  { %566 = vmatpush.msra.mxu1 %v106_v46  ;;  %547 = vmatpush.msra.mxu0 %v89_v48  ;;  %v212_v9 = vld [vmem:[#allocation2 + $0x3f0] sm:$0xff]  ;;  %v179_v11 = vld [vmem:[#allocation2 + $0x2e8] sm:$0xff]  ;;  %v194_v12 = vld [vmem:[#allocation2 + $0x360] sm:$0xff] }
  0x2d   :  { %606 = vmatpush.msra.mxu3 %v138_v47  ;;  %587 = vmatpush.msra.mxu2 %v121_v49  ;;  %v211_v13 = vld [vmem:[#allocation2 + $0x3e8] sm:$0xff]  ;;  %v161_v14 = vld [vmem:[#allocation2 + $0x258] sm:$0xff]  ;;  %v178_v15 = vld [vmem:[#allocation2 + $0x2e0] sm:$0xff] }
  0x2e   :  { %567 = vmatpush.msra.mxu1 %v105_v50  ;;  %548 = vmatpush.msra.mxu0 %v88_v52  ;;  %v193_v16 = vld [vmem:[#allocation2 + $0x358] sm:$0xff]  ;;  %v210_v17 = vld [vmem:[#allocation2 + $0x3e0] sm:$0xff]  ;;  %v160_v18 = vld [vmem:[#allocation2 + $0x250] sm:$0xff] }
  0x2f   :  { %607 = vmatpush.msra.mxu3 %v137_v51  ;;  %588 = vmatpush.msra.mxu2 %v120_v53  ;;  %v177_v19 = vld [vmem:[#allocation2 + $0x2d8] sm:$0xff]  ;;  %v192_v20 = vld [vmem:[#allocation2 + $0x350] sm:$0xff]  ;;  %v159_v22 = vld [vmem:[#allocation2 + $0x248] sm:$0xff] }
  0x30   :  { %568 = vmatpush.msra.mxu1 %v104_v54  ;;  %549 = vmatpush.msra.mxu0 %v87_v56  ;;  %v209_v21 = vld [vmem:[#allocation2 + $0x3d8] sm:$0xff]  ;;  %v176_v23 = vld [vmem:[#allocation2 + $0x2d0] sm:$0xff]  ;;  %v191_v24 = vld [vmem:[#allocation2 + $0x348] sm:$0xff] }
  0x31   :  { %608 = vmatpush.msra.mxu3 %v136_v55  ;;  %589 = vmatpush.msra.mxu2 %v119_v57  ;;  %v208_v25 = vld [vmem:[#allocation2 + $0x3d0] sm:$0xff]  ;;  %v80_v26 = vld [vmem:[%s1325_s0] sm:$0xff]  ;;  %v158_v27 = vld [vmem:[#allocation2 + $0x240] sm:$0xff] }
  0x32   :  { %569 = vmatpush.msra.mxu1 %v103_v58  ;;  %550 = vmatpush.msra.mxu0 %v86_v60  ;;  %v175_v28 = vld [vmem:[#allocation2 + $0x2c8] sm:$0xff]  ;;  %480 = vst [vmem:[#allocation1] ss:$4 sm:$0xff] %v80_v26  ;;  %v190_v29 = vld [vmem:[#allocation2 + $0x340] sm:$0xff]  ;;  %v157_v31 = vld [vmem:[#allocation2 + $0x238] sm:$0xff] }
  0x33   :  { %609 = vmatpush.msra.mxu3 %v135_v59  ;;  %590 = vmatpush.msra.mxu2 %v118_v61  ;;  %v207_v30 = vld [vmem:[#allocation2 + $0x3c8] sm:$0xff]  ;;  %v174_v32 = vld [vmem:[#allocation2 + $0x2c0] sm:$0xff]  ;;  %v189_v33 = vld [vmem:[#allocation2 + $0x338] sm:$0xff] }
  0x34   :  { %615 = vmatpush.msrb.mxu0 %v165_v62  ;;  %570 = vmatpush.msra.mxu1 %v102_v0  ;;  %v206_v34 = vld [vmem:[#allocation2 + $0x3c0] sm:$0xff]  ;;  %v156_v35 = vld [vmem:[#allocation2 + $0x230] sm:$0xff]  ;;  %v173_v36 = vld [vmem:[#allocation2 + $0x2b8] sm:$0xff] }
  0x35   :  { %655 = vmatpush.msrb.mxu2 %v197_v63  ;;  %610 = vmatpush.msra.mxu3 %v134_v1  ;;  %v188_v37 = vld [vmem:[#allocation2 + $0x330] sm:$0xff]  ;;  %v205_v38 = vld [vmem:[#allocation2 + $0x3b8] sm:$0xff]  ;;  %v155_v39 = vld [vmem:[#allocation2 + $0x228] sm:$0xff] }
  0x36   :  { %616 = vmatpush.msrb.mxu0 %v164_v2  ;;  %635 = vmatpush.msrb.mxu1 %v181_v3  ;;  %v172_v40 = vld [vmem:[#allocation2 + $0x2b0] sm:$0xff]  ;;  %v187_v41 = vld [vmem:[#allocation2 + $0x328] sm:$0xff]  ;;  %v81_v43 = vld [vmem:[%s1325_s0 + $0x8] sm:$0xff] }
  0x37   :  { %656 = vmatpush.msrb.mxu2 %v196_v4  ;;  %675 = vmatpush.msrb.mxu3 %v213_v5  ;;  %v204_v42 = vld [vmem:[#allocation2 + $0x3b0] sm:$0xff]  ;;  %v154_v44 = vld [vmem:[#allocation2 + $0x220] sm:$0xff]  ;;  %v171_v45 = vld [vmem:[#allocation2 + $0x2a8] sm:$0xff]  ;;  %482 = vst [vmem:[#allocation1 + $0x20] ss:$4 sm:$0xff] %v81_v43 }
  0x38   :  { %617 = vmatpush.msrb.mxu0 %v163_v6  ;;  %636 = vmatpush.msrb.mxu1 %v180_v7  ;;  %v82_v46 = vld [vmem:[%s1325_s0 + $0x10] sm:$0xff]  ;;  %v186_v47 = vld [vmem:[#allocation2 + $0x320] sm:$0xff]  ;;  %v153_v53 = vld [vmem:[#allocation2 + $0x218] sm:$0xff] }
  0x39   :  { %657 = vmatpush.msrb.mxu2 %v195_v8  ;;  %676 = vmatpush.msrb.mxu3 %v212_v9  ;;  %v483_v48 = vld.sshfl [vmem:[#allocation1] sm:$0xff pattern:$0x73625140]  ;;  %v485_v49 = vld.sshfl [vmem:[#allocation1 + $0x10] sm:$0xff pattern:$0x73625140] }
  0x3a   :  { %618 = vmatpush.msrb.mxu0 %v162_v10  ;;  %637 = vmatpush.msrb.mxu1 %v179_v11  ;;  %v1271_v50 = vld.sshfl [vmem:[#allocation1 + $0x8] sm:$0xff pattern:$0x73625140]  ;;  %v1273_v51 = vld.sshfl [vmem:[#allocation1 + $0x18] sm:$0xff pattern:$0x73625140] }
  0x3b   :  { %658 = vmatpush.msrb.mxu2 %v194_v12  ;;  %677 = vmatpush.msrb.mxu3 %v211_v13  ;;  %v203_v52 = vld [vmem:[#allocation2 + $0x3a8] sm:$0xff]  ;;  %v170_v54 = vld [vmem:[#allocation2 + $0x2a0] sm:$0xff]  ;;  %491 = vst [vmem:[#allocation1] ss:$4 sm:$0xff] %v82_v46  ;;  %v185_v55 = vld [vmem:[#allocation2 + $0x318] sm:$0xff] }
  0x3c   :  { %619 = vmatpush.msrb.mxu0 %v161_v14  ;;  %638 = vmatpush.msrb.mxu1 %v178_v15  ;;  %v202_v56 = vld [vmem:[#allocation2 + $0x3a0] sm:$0xff]  ;;  %v152_v57 = vld [vmem:[#allocation2 + $0x210] sm:$0xff]  ;;  %v169_v58 = vld [vmem:[#allocation2 + $0x298] sm:$0xff] }
  0x3d   :  { %659 = vmatpush.msrb.mxu2 %v193_v16  ;;  %678 = vmatpush.msrb.mxu3 %v210_v17  ;;  %v184_v59 = vld [vmem:[#allocation2 + $0x310] sm:$0xff]  ;;  %v201_v60 = vld [vmem:[#allocation2 + $0x398] sm:$0xff]  ;;  %v151_v61 = vld [vmem:[#allocation2 + $0x208] sm:$0xff] }
  0x3e   :  { %620 = vmatpush.msrb.mxu0 %v160_v18  ;;  %639 = vmatpush.msrb.mxu1 %v177_v19  ;;  %v168_v62 = vld [vmem:[#allocation2 + $0x290] sm:$0xff]  ;;  %v1278_v0 = vld.sshfl [vmem:[#allocation1 + $0x30] sm:$0xff pattern:$0x73625140]  ;;  %v150_v6 = vld [vmem:[#allocation2 + $0x200] sm:$0xff] }
  0x3f   :  { %660 = vmatpush.msrb.mxu2 %v192_v20  ;;  %679 = vmatpush.msrb.mxu3 %v209_v21  ;;  %v83_v63 = vld [vmem:[%s1325_s0 + $0x18] sm:$0xff]  ;;  %v1280_v1 = vld.sshfl [vmem:[#allocation1 + $0x20] sm:$0xff pattern:$0x73625140]  ;;  %v183_v4 = vld [vmem:[#allocation2 + $0x308] sm:$0xff] }
  0x40   :  { %621 = vmatpush.msrb.mxu0 %v159_v22  ;;  %640 = vmatpush.msrb.mxu1 %v176_v23  ;;  %v1282_v2 = vld.sshfl [vmem:[#allocation1 + $0x38] sm:$0xff pattern:$0x73625140]  ;;  %v1284_v3 = vld.sshfl [vmem:[#allocation1 + $0x28] sm:$0xff pattern:$0x73625140] }
  0x41   :  { %661 = vmatpush.msrb.mxu2 %v191_v24  ;;  %680 = vmatpush.msrb.mxu3 %v208_v25  ;;  %v200_v5 = vld [vmem:[#allocation2 + $0x390] sm:$0xff]  ;;  %492 = vst [vmem:[#allocation1 + $0x20] ss:$4 sm:$0xff] %v83_v63  ;;  %v167_v7 = vld [vmem:[#allocation2 + $0x288] sm:$0xff]  ;;  %v182_v8 = vld [vmem:[#allocation2 + $0x300] sm:$0xff] }
  0x42   :  { %622 = vmatpush.msrb.mxu0 %v158_v27  ;;  %641 = vmatpush.msrb.mxu1 %v175_v28  ;;  %v199_v9 = vld [vmem:[#allocation2 + $0x388] sm:$0xff]  ;;  %v229_v10 = vld [vmem:[#allocation2 + $0x478] sm:$0xff]  ;;  %v166_v12 = vld [vmem:[#allocation2 + $0x280] sm:$0xff] }
  0x43   :  { %662 = vmatpush.msrb.mxu2 %v190_v29  ;;  %681 = vmatpush.msrb.mxu3 %v207_v30  ;;  %v261_v11 = vld [vmem:[#allocation2 + $0x578] sm:$0xff]  ;;  %v198_v13 = vld [vmem:[#allocation2 + $0x380] sm:$0xff]  ;;  %v228_v14 = vld [vmem:[#allocation2 + $0x470] sm:$0xff] }
  0x44   :  { %623 = vmatpush.msrb.mxu0 %v157_v31  ;;  %642 = vmatpush.msrb.mxu1 %v174_v32  ;;  %v245_v15 = vld [vmem:[#allocation2 + $0x4f8] sm:$0xff]  ;;  %v260_v16 = vld [vmem:[#allocation2 + $0x570] sm:$0xff]  ;;  %v227_v18 = vld [vmem:[#allocation2 + $0x468] sm:$0xff] }
  0x45   :  { %663 = vmatpush.msrb.mxu2 %v189_v33  ;;  %682 = vmatpush.msrb.mxu3 %v206_v34  ;;  %v277_v17 = vld [vmem:[#allocation2 + $0x5f8] sm:$0xff]  ;;  %v244_v19 = vld [vmem:[#allocation2 + $0x4f0] sm:$0xff]  ;;  %v259_v20 = vld [vmem:[#allocation2 + $0x568] sm:$0xff] }
  0x46   :  { %624 = vmatpush.msrb.mxu0 %v156_v35  ;;  %643 = vmatpush.msrb.mxu1 %v173_v36  ;;  %v276_v21 = vld [vmem:[#allocation2 + $0x5f0] sm:$0xff]  ;;  %v226_v22 = vld [vmem:[#allocation2 + $0x460] sm:$0xff]  ;;  %v243_v23 = vld [vmem:[#allocation2 + $0x4e8] sm:$0xff] }
  0x47   :  { %664 = vmatpush.msrb.mxu2 %v188_v37  ;;  %683 = vmatpush.msrb.mxu3 %v205_v38  ;;  %v258_v24 = vld [vmem:[#allocation2 + $0x560] sm:$0xff]  ;;  %v275_v25 = vld [vmem:[#allocation2 + $0x5e8] sm:$0xff]  ;;  %v1288_v26 = vld.sshfl [vmem:[#allocation1] sm:$0xff pattern:$0x73625140] }
  0x48   :  { %625 = vmatpush.msrb.mxu0 %v155_v39  ;;  %644 = vmatpush.msrb.mxu1 %v172_v40  ;;  %v1290_v27 = vld.sshfl [vmem:[#allocation1 + $0x10] sm:$0xff pattern:$0x73625140]  ;;  %v1292_v28 = vld.sshfl [vmem:[#allocation1 + $0x8] sm:$0xff pattern:$0x73625140] }
  0x49   :  { %665 = vmatpush.msrb.mxu2 %v187_v41  ;;  %684 = vmatpush.msrb.mxu3 %v204_v42  ;;  %v225_v29 = vld [vmem:[#allocation2 + $0x458] sm:$0xff]  ;;  %v1297_v31 = vld.sshfl [vmem:[#allocation1 + $0x18] sm:$0xff pattern:$0x73625140]  ;;  %v242_v32 = vld [vmem:[#allocation2 + $0x4e0] sm:$0xff] }
  0x4a   :  { %626 = vmatpush.msrb.mxu0 %v154_v44  ;;  %645 = vmatpush.msrb.mxu1 %v171_v45  ;;  %v84_v30 = vld [vmem:[%s1325_s0 + $0x20] sm:$0xff]  ;;  %v274_v34 = vld [vmem:[#allocation2 + $0x5e0] sm:$0xff]  ;;  %v224_v35 = vld [vmem:[#allocation2 + $0x450] sm:$0xff] }
  0x4b   :  { %666 = vmatpush.msrb.mxu2 %v186_v47  ;;  %685 = vmatpush.msrb.mxu3 %v203_v52  ;;  %v257_v33 = vld [vmem:[#allocation2 + $0x558] sm:$0xff]  ;;  %501 = vst [vmem:[#allocation1] ss:$4 sm:$0xff] %v84_v30  ;;  %v256_v37 = vld [vmem:[#allocation2 + $0x550] sm:$0xff]  ;;  %v223_v39 = vld [vmem:[#allocation2 + $0x448] sm:$0xff] }
  0x4c   :  { %627 = vmatpush.msrb.mxu0 %v153_v53  ;;  %646 = vmatpush.msrb.mxu1 %v170_v54  ;;  %v241_v36 = vld [vmem:[#allocation2 + $0x4d8] sm:$0xff]  ;;  %v240_v40 = vld [vmem:[#allocation2 + $0x4d0] sm:$0xff]  ;;  %v255_v41 = vld [vmem:[#allocation2 + $0x548] sm:$0xff] }
  0x4d   :  { %667 = vmatpush.msrb.mxu2 %v185_v55  ;;  %686 = vmatpush.msrb.mxu3 %v202_v56  ;;  %v273_v38 = vld [vmem:[#allocation2 + $0x5d8] sm:$0xff]  ;;  %v272_v42 = vld [vmem:[#allocation2 + $0x5d0] sm:$0xff]  ;;  %v222_v43 = vld [vmem:[#allocation2 + $0x440] sm:$0xff] }
  0x4e   :  { %628 = vmatpush.msrb.mxu0 %v152_v57  ;;  %647 = vmatpush.msrb.mxu1 %v169_v58  ;;  %v239_v44 = vld [vmem:[#allocation2 + $0x4c8] sm:$0xff]  ;;  %v254_v45 = vld [vmem:[#allocation2 + $0x540] sm:$0xff]  ;;  %v221_v47 = vld [vmem:[#allocation2 + $0x438] sm:$0xff] }
  0x4f   :  { %668 = vmatpush.msrb.mxu2 %v184_v59  ;;  %687 = vmatpush.msrb.mxu3 %v201_v60  ;;  %v271_v46 = vld [vmem:[#allocation2 + $0x5c8] sm:$0xff]  ;;  %v237_v52 = vld [vmem:[#allocation2 + $0x4b8] sm:$0xff]  ;;  %v252_v53 = vld [vmem:[#allocation2 + $0x530] sm:$0xff] }
  0x50   :  { %629 = vmatpush.msrb.mxu0 %v151_v61  ;;  %648 = vmatpush.msrb.mxu1 %v168_v62  ;;  %v269_v54 = vld [vmem:[#allocation2 + $0x5b8] sm:$0xff]  ;;  %v219_v55 = vld [vmem:[#allocation2 + $0x428] sm:$0xff]  ;;  %v236_v56 = vld [vmem:[#allocation2 + $0x4b0] sm:$0xff] }
  0x51   :  { %669 = vmatpush.msrb.mxu2 %v183_v4  ;;  %688 = vmatpush.msrb.mxu3 %v200_v5  ;;  %v251_v57 = vld [vmem:[#allocation2 + $0x528] sm:$0xff]  ;;  %v268_v58 = vld [vmem:[#allocation2 + $0x5b0] sm:$0xff]  ;;  %v218_v59 = vld [vmem:[#allocation2 + $0x420] sm:$0xff] }
  0x52   :  { %630 = vmatpush.msrb.mxu0 %v150_v6  ;;  %649 = vmatpush.msrb.mxu1 %v167_v7  ;;  %v235_v60 = vld [vmem:[#allocation2 + $0x4a8] sm:$0xff]  ;;  %v250_v61 = vld [vmem:[#allocation2 + $0x520] sm:$0xff]  ;;  %v217_v63 = vld [vmem:[#allocation2 + $0x418] sm:$0xff] }
  0x53   :  { %670 = vmatpush.msrb.mxu2 %v182_v8  ;;  %689 = vmatpush.msrb.mxu3 %v199_v9  ;;  %v267_v62 = vld [vmem:[#allocation2 + $0x5a8] sm:$0xff]  ;;  %v233_v4 = vld [vmem:[#allocation2 + $0x498] sm:$0xff]  ;;  %v248_v5 = vld [vmem:[#allocation2 + $0x510] sm:$0xff] }
  0x54   :  { %551 = vmatmul.f32.vlgmr.msra.gmra.mxu0 %v483_v48  ;;  %591 = vmatmul.f32.vlgmr.msra.gmra.mxu2 %v485_v49  ;;  %v238_v48 = vld [vmem:[#allocation2 + $0x4c0] sm:$0xff]  ;;  %v253_v49 = vld [vmem:[#allocation2 + $0x538] sm:$0xff]  ;;  %v215_v7 = vld [vmem:[#allocation2 + $0x408] sm:$0xff] }
  0x55   :  { %695 = vmatpush.msra.mxu0 %v229_v10  ;;  %735 = vmatpush.msra.mxu2 %v261_v11  ;;  %v265_v6 = vld [vmem:[#allocation2 + $0x598] sm:$0xff]  ;;  %v232_v8 = vld [vmem:[#allocation2 + $0x490] sm:$0xff]  ;;  %v247_v9 = vld [vmem:[#allocation2 + $0x508] sm:$0xff] }
  0x56   :  { %650 = vmatpush.msrb.mxu1 %v166_v12  ;;  %690 = vmatpush.msrb.mxu3 %v198_v13  ;;  %v264_v10 = vld [vmem:[#allocation2 + $0x590] sm:$0xff]  ;;  %v214_v11 = vld [vmem:[#allocation2 + $0x400] sm:$0xff]  ;;  %v231_v12 = vld [vmem:[#allocation2 + $0x488] sm:$0xff] }
  0x57   :  { %571 = vmatmul.f32.vlgmr.msra.gmra.mxu1 %v1271_v50  ;;  %611 = vmatmul.f32.vlgmr.msra.gmra.mxu3 %v1273_v51  ;;  %v270_v50 = vld [vmem:[#allocation2 + $0x5c0] sm:$0xff]  ;;  %v220_v51 = vld [vmem:[#allocation2 + $0x430] sm:$0xff] }
  0x58   :  { %696 = vmatpush.msra.mxu0 %v228_v14  ;;  %715 = vmatpush.msra.mxu1 %v245_v15  ;;  %v246_v13 = vld [vmem:[#allocation2 + $0x500] sm:$0xff]  ;;  %v263_v14 = vld [vmem:[#allocation2 + $0x588] sm:$0xff]  ;;  %v293_v15 = vld [vmem:[#allocation2 + $0x678] sm:$0xff] }
  0x59   :  { %736 = vmatpush.msra.mxu2 %v260_v16  ;;  %755 = vmatpush.msra.mxu3 %v277_v17  ;;  %v325_v16 = vld [vmem:[#allocation2 + $0x778] sm:$0xff]  ;;  %v230_v17 = vld [vmem:[#allocation2 + $0x480] sm:$0xff] }
  0x5a   :  { %697 = vmatpush.msra.mxu0 %v227_v18  ;;  %716 = vmatpush.msra.mxu1 %v244_v19  ;;  %v262_v18 = vld [vmem:[#allocation2 + $0x580] sm:$0xff]  ;;  %v292_v19 = vld [vmem:[#allocation2 + $0x670] sm:$0xff] }
  0x5b   :  { %737 = vmatpush.msra.mxu2 %v259_v20  ;;  %756 = vmatpush.msra.mxu3 %v276_v21  ;;  %v309_v20 = vld [vmem:[#allocation2 + $0x6f8] sm:$0xff]  ;;  %v324_v21 = vld [vmem:[#allocation2 + $0x770] sm:$0xff]  ;;  %v290_v30 = vld [vmem:[#allocation2 + $0x660] sm:$0xff] }
  0x5c   :  { %698 = vmatpush.msra.mxu0 %v226_v22  ;;  %717 = vmatpush.msra.mxu1 %v243_v23  ;;  %v341_v22 = vld [vmem:[#allocation2 + $0x7f8] sm:$0xff]  ;;  %v291_v23 = vld [vmem:[#allocation2 + $0x668] sm:$0xff] }
  0x5d   :  { %738 = vmatpush.msra.mxu2 %v258_v24  ;;  %757 = vmatpush.msra.mxu3 %v275_v25  ;;  %v308_v24 = vld [vmem:[#allocation2 + $0x6f0] sm:$0xff]  ;;  %v323_v25 = vld [vmem:[#allocation2 + $0x768] sm:$0xff] }
  0x5e   :  { %671 = vmatmul.f32.vlgmr.msrb.gmra.mxu2 %v1278_v0  ;;  %699 = vmatpush.msra.mxu0 %v225_v29  ;;  %v234_v0 = vld [vmem:[#allocation2 + $0x4a0] sm:$0xff]  ;;  %v340_v29 = vld [vmem:[#allocation2 + $0x7f0] sm:$0xff] }
  0x5f   :  { %718 = vmatpush.msra.mxu1 %v242_v32  ;;  %739 = vmatpush.msra.mxu2 %v257_v33  ;;  %v1311_v32 = vld.sshfl [vmem:[#allocation1 + $0x28] sm:$0xff pattern:$0x73625140]  ;;  %v307_v33 = vld [vmem:[#allocation2 + $0x6e8] sm:$0xff] }
  0x60   :  { %758 = vmatpush.msra.mxu3 %v274_v34  ;;  %631 = vmatmul.f32.vlgmr.msrb.gmra.mxu0 %v1280_v1  ;;  %v249_v1 = vld [vmem:[#allocation2 + $0x518] sm:$0xff]  ;;  %v85_v34 = vld [vmem:[%s1325_s0 + $0x28] sm:$0xff]  ;;  %s1219_s0 = smov [#allocation10]  }
  0x61   :  { %691 = vmatmul.f32.vlgmr.msrb.gmra.mxu3 %v1282_v2  ;;  %700 = vmatpush.msra.mxu0 %v224_v35  ;;  %v266_v2 = vld [vmem:[#allocation2 + $0x5a0] sm:$0xff]  ;;  %v339_v35 = vld [vmem:[#allocation2 + $0x7e8] sm:$0xff]  ;;  %s1062_s23 = sshll.u32 %s1219_s0, 4  ;;  %s1063_s23 = int_to_ptr.vmem [resolvable:$true] %s1062_s23 }
  0x62   :  { %719 = vmatpush.msra.mxu1 %v241_v36  ;;  %740 = vmatpush.msra.mxu2 %v256_v37  ;;  %v289_v36 = vld [vmem:[#allocation2 + $0x658] sm:$0xff]  ;;  %v306_v37 = vld [vmem:[#allocation2 + $0x6e0] sm:$0xff] }
  0x63   :  { %759 = vmatpush.msra.mxu3 %v273_v38  ;;  %651 = vmatmul.f32.vlgmr.msrb.gmra.mxu1 %v1284_v3  ;;  %v216_v3 = vld [vmem:[#allocation2 + $0x410] sm:$0xff]  ;;  %v321_v38 = vld [vmem:[#allocation2 + $0x758] sm:$0xff] }
  0x64   :  { %701 = vmatpush.msra.mxu0 %v223_v39  ;;  %720 = vmatpush.msra.mxu1 %v240_v40  ;;  %v338_v39 = vld [vmem:[#allocation2 + $0x7e0] sm:$0xff]  ;;  %v288_v40 = vld [vmem:[#allocation2 + $0x650] sm:$0xff] }
  0x65   :  { %741 = vmatpush.msra.mxu2 %v255_v41  ;;  %760 = vmatpush.msra.mxu3 %v272_v42  ;;  %v305_v41 = vld [vmem:[#allocation2 + $0x6d8] sm:$0xff]  ;;  %v320_v42 = vld [vmem:[#allocation2 + $0x750] sm:$0xff] }
  0x66   :  { %702 = vmatpush.msra.mxu0 %v222_v43  ;;  %721 = vmatpush.msra.mxu1 %v239_v44  ;;  %v337_v43 = vld [vmem:[#allocation2 + $0x7d8] sm:$0xff]  ;;  %v287_v44 = vld [vmem:[#allocation2 + $0x648] sm:$0xff] }
  0x67   :  { %742 = vmatpush.msra.mxu2 %v254_v45  ;;  %761 = vmatpush.msra.mxu3 %v271_v46  ;;  %v304_v45 = vld [vmem:[#allocation2 + $0x6d0] sm:$0xff]  ;;  %v319_v46 = vld [vmem:[#allocation2 + $0x748] sm:$0xff] }
  0x68   :  { %703 = vmatpush.msra.mxu0 %v221_v47  ;;  %722 = vmatpush.msra.mxu1 %v238_v48  ;;  %v336_v47 = vld [vmem:[#allocation2 + $0x7d0] sm:$0xff]  ;;  %v286_v48 = vld [vmem:[#allocation2 + $0x640] sm:$0xff] }
  0x69   :  { %743 = vmatpush.msra.mxu2 %v253_v49  ;;  %762 = vmatpush.msra.mxu3 %v270_v50  ;;  %v303_v49 = vld [vmem:[#allocation2 + $0x6c8] sm:$0xff]  ;;  %v318_v50 = vld [vmem:[#allocation2 + $0x740] sm:$0xff] }
  0x6a   :  { %704 = vmatpush.msra.mxu0 %v220_v51  ;;  %723 = vmatpush.msra.mxu1 %v237_v52  ;;  %v335_v51 = vld [vmem:[#allocation2 + $0x7c8] sm:$0xff]  ;;  %v285_v52 = vld [vmem:[#allocation2 + $0x638] sm:$0xff] }
  0x6b   :  { %744 = vmatpush.msra.mxu2 %v252_v53  ;;  %763 = vmatpush.msra.mxu3 %v269_v54  ;;  %v302_v53 = vld [vmem:[#allocation2 + $0x6c0] sm:$0xff]  ;;  %v317_v54 = vld [vmem:[#allocation2 + $0x738] sm:$0xff] }
  0x6c   :  { %705 = vmatpush.msra.mxu0 %v219_v55  ;;  %724 = vmatpush.msra.mxu1 %v236_v56  ;;  %v334_v55 = vld [vmem:[#allocation2 + $0x7c0] sm:$0xff]  ;;  %v284_v56 = vld [vmem:[#allocation2 + $0x630] sm:$0xff] }
  0x6d   :  { %745 = vmatpush.msra.mxu2 %v251_v57  ;;  %764 = vmatpush.msra.mxu3 %v268_v58  ;;  %v301_v57 = vld [vmem:[#allocation2 + $0x6b8] sm:$0xff]  ;;  %v316_v58 = vld [vmem:[#allocation2 + $0x730] sm:$0xff] }
  0x6e   :  { %706 = vmatpush.msra.mxu0 %v218_v59  ;;  %725 = vmatpush.msra.mxu1 %v235_v60  ;;  %v333_v59 = vld [vmem:[#allocation2 + $0x7b8] sm:$0xff]  ;;  %v283_v60 = vld [vmem:[#allocation2 + $0x628] sm:$0xff] }
  0x6f   :  { %746 = vmatpush.msra.mxu2 %v250_v61  ;;  %765 = vmatpush.msra.mxu3 %v267_v62  ;;  %v300_v61 = vld [vmem:[#allocation2 + $0x6b0] sm:$0xff]  ;;  %v315_v62 = vld [vmem:[#allocation2 + $0x728] sm:$0xff] }
  0x70   :  { %707 = vmatpush.msra.mxu0 %v217_v63  ;;  %726 = vmatpush.msra.mxu1 %v234_v0  ;;  %v332_v63 = vld [vmem:[#allocation2 + $0x7b0] sm:$0xff]  ;;  %v282_v0 = vld [vmem:[#allocation2 + $0x620] sm:$0xff] }
  0x71   :  { %747 = vmatpush.msra.mxu2 %v249_v1  ;;  %766 = vmatpush.msra.mxu3 %v266_v2  ;;  %v299_v1 = vld [vmem:[#allocation2 + $0x6a8] sm:$0xff]  ;;  %v314_v2 = vld [vmem:[#allocation2 + $0x720] sm:$0xff] }
  0x72   :  { %708 = vmatpush.msra.mxu0 %v216_v3  ;;  %727 = vmatpush.msra.mxu1 %v233_v4  ;;  %v331_v3 = vld [vmem:[#allocation2 + $0x7a8] sm:$0xff]  ;;  %v281_v4 = vld [vmem:[#allocation2 + $0x618] sm:$0xff] }
  0x73   :  { %748 = vmatpush.msra.mxu2 %v248_v5  ;;  %767 = vmatpush.msra.mxu3 %v265_v6  ;;  %v298_v5 = vld [vmem:[#allocation2 + $0x6a0] sm:$0xff]  ;;  %v313_v6 = vld [vmem:[#allocation2 + $0x718] sm:$0xff] }
  0x74   :  { %709 = vmatpush.msra.mxu0 %v215_v7  ;;  %728 = vmatpush.msra.mxu1 %v232_v8  ;;  %v330_v7 = vld [vmem:[#allocation2 + $0x7a0] sm:$0xff]  ;;  %v280_v8 = vld [vmem:[#allocation2 + $0x610] sm:$0xff] }
  0x75   :  { %749 = vmatpush.msra.mxu2 %v247_v9  ;;  %768 = vmatpush.msra.mxu3 %v264_v10  ;;  %v297_v9 = vld [vmem:[#allocation2 + $0x698] sm:$0xff]  ;;  %v312_v10 = vld [vmem:[#allocation2 + $0x710] sm:$0xff] }
  0x76   :  { %710 = vmatpush.msra.mxu0 %v214_v11  ;;  %729 = vmatpush.msra.mxu1 %v231_v12  ;;  %v329_v11 = vld [vmem:[#allocation2 + $0x798] sm:$0xff]  ;;  %v279_v12 = vld [vmem:[#allocation2 + $0x608] sm:$0xff] }
  0x77   :  { %750 = vmatpush.msra.mxu2 %v246_v13  ;;  %769 = vmatpush.msra.mxu3 %v263_v14  ;;  %v296_v13 = vld [vmem:[#allocation2 + $0x690] sm:$0xff]  ;;  %v311_v14 = vld [vmem:[#allocation2 + $0x708] sm:$0xff] }
  0x78   :  { %711 = vmatmul.f32.vlgmr.msra.gmra.mxu0 %v1288_v26  ;;  %751 = vmatmul.f32.vlgmr.msra.gmra.mxu2 %v1290_v27  ;;  %v1307_v26 = vld.sshfl [vmem:[#allocation1 + $0x20] sm:$0xff pattern:$0x73625140]  ;;  %v1309_v27 = vld.sshfl [vmem:[#allocation1 + $0x30] sm:$0xff pattern:$0x73625140] }
  0x79   :  { %775 = vmatpush.msrb.mxu0 %v293_v15  ;;  %815 = vmatpush.msrb.mxu2 %v325_v16  ;;  %v328_v15 = vld [vmem:[#allocation2 + $0x790] sm:$0xff]  ;;  %v278_v16 = vld [vmem:[#allocation2 + $0x600] sm:$0xff] }
  0x7a   :  { %730 = vmatpush.msra.mxu1 %v230_v17  ;;  %770 = vmatpush.msra.mxu3 %v262_v18  ;;  %v295_v17 = vld [vmem:[#allocation2 + $0x688] sm:$0xff]  ;;  %v310_v18 = vld [vmem:[#allocation2 + $0x700] sm:$0xff] }
  0x7b   :  { %731 = vmatmul.f32.vlgmr.msra.gmra.mxu1 %v1292_v28  ;;  %771 = vmatmul.f32.vlgmr.msra.gmra.mxu3 %v1297_v31  ;;  %v1316_v28 = vld.sshfl [vmem:[#allocation1 + $0x38] sm:$0xff pattern:$0x73625140]  ;;  %v322_v31 = vld [vmem:[#allocation2 + $0x760] sm:$0xff] }
  0x7c   :  { %776 = vmatpush.msrb.mxu0 %v292_v19  ;;  %795 = vmatpush.msrb.mxu1 %v309_v20  ;;  %502 = vst [vmem:[#allocation1 + $0x20] ss:$4 sm:$0xff] %v85_v34  ;;  %v327_v19 = vld [vmem:[#allocation2 + $0x788] sm:$0xff]  ;;  %v357_v20 = vld [vmem:[#allocation2 + $0x878] sm:$0xff]  ;;  %v372_v34 = vld [vmem:[#allocation2 + $0x8f0] sm:$0xff] }
  0x7d   :  { %816 = vmatpush.msrb.mxu2 %v324_v21  ;;  %835 = vmatpush.msrb.mxu3 %v341_v22  ;;  %v389_v21 = vld [vmem:[#allocation2 + $0x978] sm:$0xff]  ;;  %v294_v22 = vld [vmem:[#allocation2 + $0x680] sm:$0xff] }
  0x7e   :  { %777 = vmatpush.msrb.mxu0 %v291_v23  ;;  %796 = vmatpush.msrb.mxu1 %v308_v24  ;;  %v326_v23 = vld [vmem:[#allocation2 + $0x780] sm:$0xff]  ;;  %v356_v24 = vld [vmem:[#allocation2 + $0x870] sm:$0xff] }
  0x7f   :  { %817 = vmatpush.msrb.mxu2 %v323_v25  ;;  %836 = vmatpush.msrb.mxu3 %v340_v29  ;;  %v373_v25 = vld [vmem:[#allocation2 + $0x8f8] sm:$0xff]  ;;  %v388_v29 = vld [vmem:[#allocation2 + $0x970] sm:$0xff] }
  0x80   :  { %778 = vmatpush.msrb.mxu0 %v290_v30  ;;  %797 = vmatpush.msrb.mxu1 %v307_v33  ;;  %v405_v30 = vld [vmem:[#allocation2 + $0x9f8] sm:$0xff]  ;;  %v355_v33 = vld [vmem:[#allocation2 + $0x868] sm:$0xff] }
  0x81   :  { %818 = vmatpush.msrb.mxu2 %v322_v31  ;;  %837 = vmatpush.msrb.mxu3 %v339_v35  ;;  %v387_v31 = vld [vmem:[#allocation2 + $0x968] sm:$0xff] }
  0x82   :  { %779 = vmatpush.msrb.mxu0 %v289_v36  ;;  %798 = vmatpush.msrb.mxu1 %v306_v37  ;;  %v371_v35 = vld [vmem:[#allocation2 + $0x8e8] sm:$0xff]  ;;  %v386_v36 = vld [vmem:[#allocation2 + $0x960] sm:$0xff] }
  0x83   :  { %819 = vmatpush.msrb.mxu2 %v321_v38  ;;  %838 = vmatpush.msrb.mxu3 %v338_v39  ;;  %v403_v37 = vld [vmem:[#allocation2 + $0x9e8] sm:$0xff]  ;;  %v353_v38 = vld [vmem:[#allocation2 + $0x858] sm:$0xff]  ;;  %v402_v39 = vld [vmem:[#allocation2 + $0x9e0] sm:$0xff] }
  0x84   :  { %780 = vmatpush.msrb.mxu0 %v288_v40  ;;  %799 = vmatpush.msrb.mxu1 %v305_v41  ;;  %v352_v40 = vld [vmem:[#allocation2 + $0x850] sm:$0xff]  ;;  %v369_v41 = vld [vmem:[#allocation2 + $0x8d8] sm:$0xff] }
  0x85   :  { %820 = vmatpush.msrb.mxu2 %v320_v42  ;;  %839 = vmatpush.msrb.mxu3 %v337_v43  ;;  %v384_v42 = vld [vmem:[#allocation2 + $0x950] sm:$0xff]  ;;  %v401_v43 = vld [vmem:[#allocation2 + $0x9d8] sm:$0xff] }
  0x86   :  { %781 = vmatpush.msrb.mxu0 %v287_v44  ;;  %800 = vmatpush.msrb.mxu1 %v304_v45  ;;  %v351_v44 = vld [vmem:[#allocation2 + $0x848] sm:$0xff]  ;;  %v368_v45 = vld [vmem:[#allocation2 + $0x8d0] sm:$0xff] }
  0x87   :  { %821 = vmatpush.msrb.mxu2 %v319_v46  ;;  %840 = vmatpush.msrb.mxu3 %v336_v47  ;;  %v383_v46 = vld [vmem:[#allocation2 + $0x948] sm:$0xff]  ;;  %v400_v47 = vld [vmem:[#allocation2 + $0x9d0] sm:$0xff] }
  0x88   :  { %782 = vmatpush.msrb.mxu0 %v286_v48  ;;  %801 = vmatpush.msrb.mxu1 %v303_v49  ;;  %v350_v48 = vld [vmem:[#allocation2 + $0x840] sm:$0xff]  ;;  %v367_v49 = vld [vmem:[#allocation2 + $0x8c8] sm:$0xff] }
  0x89   :  { %822 = vmatpush.msrb.mxu2 %v318_v50  ;;  %841 = vmatpush.msrb.mxu3 %v335_v51  ;;  %v382_v50 = vld [vmem:[#allocation2 + $0x940] sm:$0xff]  ;;  %v399_v51 = vld [vmem:[#allocation2 + $0x9c8] sm:$0xff] }
  0x8a   :  { %783 = vmatpush.msrb.mxu0 %v285_v52  ;;  %802 = vmatpush.msrb.mxu1 %v302_v53  ;;  %v349_v52 = vld [vmem:[#allocation2 + $0x838] sm:$0xff]  ;;  %v366_v53 = vld [vmem:[#allocation2 + $0x8c0] sm:$0xff] }
  0x8b   :  { %823 = vmatpush.msrb.mxu2 %v317_v54  ;;  %842 = vmatpush.msrb.mxu3 %v334_v55  ;;  %v381_v54 = vld [vmem:[#allocation2 + $0x938] sm:$0xff]  ;;  %v398_v55 = vld [vmem:[#allocation2 + $0x9c0] sm:$0xff] }
  0x8c   :  { %784 = vmatpush.msrb.mxu0 %v284_v56  ;;  %803 = vmatpush.msrb.mxu1 %v301_v57  ;;  %v348_v56 = vld [vmem:[#allocation2 + $0x830] sm:$0xff]  ;;  %v365_v57 = vld [vmem:[#allocation2 + $0x8b8] sm:$0xff] }
  0x8d   :  { %824 = vmatpush.msrb.mxu2 %v316_v58  ;;  %843 = vmatpush.msrb.mxu3 %v333_v59  ;;  %v380_v58 = vld [vmem:[#allocation2 + $0x930] sm:$0xff]  ;;  %v397_v59 = vld [vmem:[#allocation2 + $0x9b8] sm:$0xff] }
  0x8e   :  { %785 = vmatpush.msrb.mxu0 %v283_v60  ;;  %804 = vmatpush.msrb.mxu1 %v300_v61  ;;  %v347_v60 = vld [vmem:[#allocation2 + $0x828] sm:$0xff]  ;;  %v364_v61 = vld [vmem:[#allocation2 + $0x8b0] sm:$0xff] }
  0x8f   :  { %825 = vmatpush.msrb.mxu2 %v315_v62  ;;  %844 = vmatpush.msrb.mxu3 %v332_v63  ;;  %v379_v62 = vld [vmem:[#allocation2 + $0x928] sm:$0xff]  ;;  %v396_v63 = vld [vmem:[#allocation2 + $0x9b0] sm:$0xff] }
  0x90   :  { %786 = vmatpush.msrb.mxu0 %v282_v0  ;;  %805 = vmatpush.msrb.mxu1 %v299_v1  ;;  %v346_v0 = vld [vmem:[#allocation2 + $0x820] sm:$0xff]  ;;  %v363_v1 = vld [vmem:[#allocation2 + $0x8a8] sm:$0xff] }
  0x91   :  { %826 = vmatpush.msrb.mxu2 %v314_v2  ;;  %845 = vmatpush.msrb.mxu3 %v331_v3  ;;  %v378_v2 = vld [vmem:[#allocation2 + $0x920] sm:$0xff]  ;;  %v395_v3 = vld [vmem:[#allocation2 + $0x9a8] sm:$0xff] }
  0x92   :  { %787 = vmatpush.msrb.mxu0 %v281_v4  ;;  %806 = vmatpush.msrb.mxu1 %v298_v5  ;;  %v345_v4 = vld [vmem:[#allocation2 + $0x818] sm:$0xff]  ;;  %v362_v5 = vld [vmem:[#allocation2 + $0x8a0] sm:$0xff] }
  0x93   :  { %827 = vmatpush.msrb.mxu2 %v313_v6  ;;  %846 = vmatpush.msrb.mxu3 %v330_v7  ;;  %v377_v6 = vld [vmem:[#allocation2 + $0x918] sm:$0xff]  ;;  %v394_v7 = vld [vmem:[#allocation2 + $0x9a0] sm:$0xff] }
  0x94   :  { %788 = vmatpush.msrb.mxu0 %v280_v8  ;;  %807 = vmatpush.msrb.mxu1 %v297_v9  ;;  %v344_v8 = vld [vmem:[#allocation2 + $0x810] sm:$0xff]  ;;  %v361_v9 = vld [vmem:[#allocation2 + $0x898] sm:$0xff] }
  0x95   :  { %828 = vmatpush.msrb.mxu2 %v312_v10  ;;  %847 = vmatpush.msrb.mxu3 %v329_v11  ;;  %v376_v10 = vld [vmem:[#allocation2 + $0x910] sm:$0xff]  ;;  %v393_v11 = vld [vmem:[#allocation2 + $0x998] sm:$0xff] }
  0x96   :  { %789 = vmatpush.msrb.mxu0 %v279_v12  ;;  %808 = vmatpush.msrb.mxu1 %v296_v13  ;;  %v343_v12 = vld [vmem:[#allocation2 + $0x808] sm:$0xff]  ;;  %v360_v13 = vld [vmem:[#allocation2 + $0x890] sm:$0xff] }
  0x97   :  { %829 = vmatpush.msrb.mxu2 %v311_v14  ;;  %848 = vmatpush.msrb.mxu3 %v328_v15  ;;  %v375_v14 = vld [vmem:[#allocation2 + $0x908] sm:$0xff]  ;;  %v392_v15 = vld [vmem:[#allocation2 + $0x990] sm:$0xff] }
  0x98   :  { %790 = vmatpush.msrb.mxu0 %v278_v16  ;;  %809 = vmatpush.msrb.mxu1 %v295_v17  ;;  %v342_v16 = vld [vmem:[#allocation2 + $0x800] sm:$0xff]  ;;  %v359_v17 = vld [vmem:[#allocation2 + $0x888] sm:$0xff] }
  0x99   :  { %830 = vmatpush.msrb.mxu2 %v310_v18  ;;  %849 = vmatpush.msrb.mxu3 %v327_v19  ;;  %v374_v18 = vld [vmem:[#allocation2 + $0x900] sm:$0xff]  ;;  %v391_v19 = vld [vmem:[#allocation2 + $0x988] sm:$0xff] }
  0x9a   :  { %791 = vmatmul.f32.vlgmr.msrb.gmra.mxu0 %v1307_v26  ;;  %831 = vmatmul.f32.vlgmr.msrb.gmra.mxu2 %v1309_v27  ;;  %v404_v26 = vld [vmem:[#allocation2 + $0x9f0] sm:$0xff]  ;;  %v354_v27 = vld [vmem:[#allocation2 + $0x860] sm:$0xff] }
  0x9b   :  { %855 = vmatpush.msra.mxu0 %v357_v20  ;;  %895 = vmatpush.msra.mxu2 %v389_v21  ;;  %v503_v20 = vld.sshfl [vmem:[#allocation1] sm:$0xff pattern:$0x73625140]  ;;  %v505_v21 = vld.sshfl [vmem:[#allocation1 + $0x10] sm:$0xff pattern:$0x73625140] }
  0x9c   :  { %810 = vmatpush.msrb.mxu1 %v294_v22  ;;  %850 = vmatpush.msrb.mxu3 %v326_v23  ;;  %v421_v22 = vld [vmem:[#allocation2 + $0xa78] sm:$0xff] }
  0x9d   :  { %811 = vmatmul.f32.vlgmr.msrb.gmra.mxu1 %v1311_v32  ;;  %851 = vmatmul.f32.vlgmr.msrb.gmra.mxu3 %v1316_v28  ;;  %v370_v32 = vld [vmem:[#allocation2 + $0x8e0] sm:$0xff]  ;;  %v385_v28 = vld [vmem:[#allocation2 + $0x958] sm:$0xff] }
  0x9e   :  { %856 = vmatpush.msra.mxu0 %v356_v24  ;;  %875 = vmatpush.msra.mxu1 %v373_v25  ;;  %v453_v23 = vld [vmem:[#allocation2 + $0xb78] sm:$0xff]  ;;  %v358_v24 = vld [vmem:[#allocation2 + $0x880] sm:$0xff] }
  0x9f   :  { %896 = vmatpush.msra.mxu2 %v388_v29  ;;  %915 = vmatpush.msra.mxu3 %v405_v30  ;;  %v390_v25 = vld [vmem:[#allocation2 + $0x980] sm:$0xff]  ;;  %v506_v30 = vld.sshfl [vmem:[#allocation1 + $0x18] sm:$0xff pattern:$0x73625140] }
  0xa0   :  { %857 = vmatpush.msra.mxu0 %v355_v33  ;;  %876 = vmatpush.msra.mxu1 %v372_v34  ;;  %v504_v29 = vld.sshfl [vmem:[#allocation1 + $0x8] sm:$0xff pattern:$0x73625140]  ;;  %v420_v33 = vld [vmem:[#allocation2 + $0xa70] sm:$0xff]  ;;  %v437_v34 = vld [vmem:[#allocation2 + $0xaf8] sm:$0xff] }
  0xa1   :  { %897 = vmatpush.msra.mxu2 %v387_v31  ;;  %916 = vmatpush.msra.mxu3 %v404_v26  ;;  %v452_v31 = vld [vmem:[#allocation2 + $0xb70] sm:$0xff]  ;;  %v469_v26 = vld [vmem:[#allocation2 + $0xbf8] sm:$0xff] }
  0xa2   :  { %858 = vmatpush.msra.mxu0 %v354_v27  ;;  %877 = vmatpush.msra.mxu1 %v371_v35  ;;  %v419_v27 = vld [vmem:[#allocation2 + $0xa68] sm:$0xff]  ;;  %v436_v35 = vld [vmem:[#allocation2 + $0xaf0] sm:$0xff] }
  0xa3   :  { %898 = vmatpush.msra.mxu2 %v386_v36  ;;  %917 = vmatpush.msra.mxu3 %v403_v37  ;;  %v451_v36 = vld [vmem:[#allocation2 + $0xb68] sm:$0xff]  ;;  %v468_v37 = vld [vmem:[#allocation2 + $0xbf0] sm:$0xff] }
  0xa4   :  { %859 = vmatpush.msra.mxu0 %v353_v38  ;;  %878 = vmatpush.msra.mxu1 %v370_v32  ;;  %v418_v38 = vld [vmem:[#allocation2 + $0xa60] sm:$0xff]  ;;  %v435_v32 = vld [vmem:[#allocation2 + $0xae8] sm:$0xff] }
  0xa5   :  { %899 = vmatpush.msra.mxu2 %v385_v28  ;;  %918 = vmatpush.msra.mxu3 %v402_v39  ;;  %v450_v28 = vld [vmem:[#allocation2 + $0xb60] sm:$0xff]  ;;  %v467_v39 = vld [vmem:[#allocation2 + $0xbe8] sm:$0xff] }
  0xa6   :  { %860 = vmatpush.msra.mxu0 %v352_v40  ;;  %879 = vmatpush.msra.mxu1 %v369_v41  ;;  %v417_v40 = vld [vmem:[#allocation2 + $0xa58] sm:$0xff]  ;;  %v434_v41 = vld [vmem:[#allocation2 + $0xae0] sm:$0xff] }
  0xa7   :  { %900 = vmatpush.msra.mxu2 %v384_v42  ;;  %919 = vmatpush.msra.mxu3 %v401_v43  ;;  %v449_v42 = vld [vmem:[#allocation2 + $0xb58] sm:$0xff]  ;;  %v466_v43 = vld [vmem:[#allocation2 + $0xbe0] sm:$0xff] }
  0xa8   :  { %861 = vmatpush.msra.mxu0 %v351_v44  ;;  %880 = vmatpush.msra.mxu1 %v368_v45  ;;  %v416_v44 = vld [vmem:[#allocation2 + $0xa50] sm:$0xff]  ;;  %v433_v45 = vld [vmem:[#allocation2 + $0xad8] sm:$0xff] }
  0xa9   :  { %901 = vmatpush.msra.mxu2 %v383_v46  ;;  %920 = vmatpush.msra.mxu3 %v400_v47  ;;  %v448_v46 = vld [vmem:[#allocation2 + $0xb50] sm:$0xff]  ;;  %v465_v47 = vld [vmem:[#allocation2 + $0xbd8] sm:$0xff] }
  0xaa   :  { %862 = vmatpush.msra.mxu0 %v350_v48  ;;  %881 = vmatpush.msra.mxu1 %v367_v49  ;;  %v415_v48 = vld [vmem:[#allocation2 + $0xa48] sm:$0xff]  ;;  %v432_v49 = vld [vmem:[#allocation2 + $0xad0] sm:$0xff] }
  0xab   :  { %902 = vmatpush.msra.mxu2 %v382_v50  ;;  %921 = vmatpush.msra.mxu3 %v399_v51  ;;  %v447_v50 = vld [vmem:[#allocation2 + $0xb48] sm:$0xff]  ;;  %v464_v51 = vld [vmem:[#allocation2 + $0xbd0] sm:$0xff] }
  0xac   :  { %863 = vmatpush.msra.mxu0 %v349_v52  ;;  %882 = vmatpush.msra.mxu1 %v366_v53  ;;  %v414_v52 = vld [vmem:[#allocation2 + $0xa40] sm:$0xff]  ;;  %v431_v53 = vld [vmem:[#allocation2 + $0xac8] sm:$0xff] }
  0xad   :  { %903 = vmatpush.msra.mxu2 %v381_v54  ;;  %922 = vmatpush.msra.mxu3 %v398_v55  ;;  %v446_v54 = vld [vmem:[#allocation2 + $0xb40] sm:$0xff]  ;;  %v463_v55 = vld [vmem:[#allocation2 + $0xbc8] sm:$0xff] }
  0xae   :  { %864 = vmatpush.msra.mxu0 %v348_v56  ;;  %883 = vmatpush.msra.mxu1 %v365_v57  ;;  %v413_v56 = vld [vmem:[#allocation2 + $0xa38] sm:$0xff]  ;;  %v430_v57 = vld [vmem:[#allocation2 + $0xac0] sm:$0xff] }
  0xaf   :  { %904 = vmatpush.msra.mxu2 %v380_v58  ;;  %923 = vmatpush.msra.mxu3 %v397_v59  ;;  %v445_v58 = vld [vmem:[#allocation2 + $0xb38] sm:$0xff]  ;;  %v462_v59 = vld [vmem:[#allocation2 + $0xbc0] sm:$0xff] }
  0xb0   :  { %865 = vmatpush.msra.mxu0 %v347_v60  ;;  %884 = vmatpush.msra.mxu1 %v364_v61  ;;  %v412_v60 = vld [vmem:[#allocation2 + $0xa30] sm:$0xff]  ;;  %v429_v61 = vld [vmem:[#allocation2 + $0xab8] sm:$0xff] }
  0xb1   :  { %905 = vmatpush.msra.mxu2 %v379_v62  ;;  %924 = vmatpush.msra.mxu3 %v396_v63  ;;  %v444_v62 = vld [vmem:[#allocation2 + $0xb30] sm:$0xff]  ;;  %v461_v63 = vld [vmem:[#allocation2 + $0xbb8] sm:$0xff] }
  0xb2   :  { %866 = vmatpush.msra.mxu0 %v346_v0  ;;  %885 = vmatpush.msra.mxu1 %v363_v1  ;;  %v411_v0 = vld [vmem:[#allocation2 + $0xa28] sm:$0xff]  ;;  %v428_v1 = vld [vmem:[#allocation2 + $0xab0] sm:$0xff] }
  0xb3   :  { %906 = vmatpush.msra.mxu2 %v378_v2  ;;  %925 = vmatpush.msra.mxu3 %v395_v3  ;;  %v443_v2 = vld [vmem:[#allocation2 + $0xb28] sm:$0xff]  ;;  %v460_v3 = vld [vmem:[#allocation2 + $0xbb0] sm:$0xff] }
  0xb4   :  { %867 = vmatpush.msra.mxu0 %v345_v4  ;;  %886 = vmatpush.msra.mxu1 %v362_v5  ;;  %v410_v4 = vld [vmem:[#allocation2 + $0xa20] sm:$0xff]  ;;  %v427_v5 = vld [vmem:[#allocation2 + $0xaa8] sm:$0xff] }
  0xb5   :  { %907 = vmatpush.msra.mxu2 %v377_v6  ;;  %926 = vmatpush.msra.mxu3 %v394_v7  ;;  %v442_v6 = vld [vmem:[#allocation2 + $0xb20] sm:$0xff]  ;;  %v459_v7 = vld [vmem:[#allocation2 + $0xba8] sm:$0xff] }
  0xb6   :  { %868 = vmatpush.msra.mxu0 %v344_v8  ;;  %887 = vmatpush.msra.mxu1 %v361_v9  ;;  %v409_v8 = vld [vmem:[#allocation2 + $0xa18] sm:$0xff]  ;;  %v426_v9 = vld [vmem:[#allocation2 + $0xaa0] sm:$0xff] }
  0xb7   :  { %908 = vmatpush.msra.mxu2 %v376_v10  ;;  %927 = vmatpush.msra.mxu3 %v393_v11  ;;  %v441_v10 = vld [vmem:[#allocation2 + $0xb18] sm:$0xff]  ;;  %v458_v11 = vld [vmem:[#allocation2 + $0xba0] sm:$0xff] }
  0xb8   :  { %869 = vmatpush.msra.mxu0 %v343_v12  ;;  %888 = vmatpush.msra.mxu1 %v360_v13  ;;  %v408_v12 = vld [vmem:[#allocation2 + $0xa10] sm:$0xff]  ;;  %v425_v13 = vld [vmem:[#allocation2 + $0xa98] sm:$0xff] }
  0xb9   :  { %909 = vmatpush.msra.mxu2 %v375_v14  ;;  %928 = vmatpush.msra.mxu3 %v392_v15  ;;  %v440_v14 = vld [vmem:[#allocation2 + $0xb10] sm:$0xff]  ;;  %v457_v15 = vld [vmem:[#allocation2 + $0xb98] sm:$0xff] }
  0xba   :  { %870 = vmatpush.msra.mxu0 %v342_v16  ;;  %889 = vmatpush.msra.mxu1 %v359_v17  ;;  %v407_v16 = vld [vmem:[#allocation2 + $0xa08] sm:$0xff]  ;;  %v424_v17 = vld [vmem:[#allocation2 + $0xa90] sm:$0xff] }
  0xbb   :  { %910 = vmatpush.msra.mxu2 %v374_v18  ;;  %929 = vmatpush.msra.mxu3 %v391_v19  ;;  %v439_v18 = vld [vmem:[#allocation2 + $0xb08] sm:$0xff]  ;;  %v456_v19 = vld [vmem:[#allocation2 + $0xb90] sm:$0xff] }
  0xbc   :  { %871 = vmatmul.f32.vlgmr.msra.gmra.mxu0 %v503_v20  ;;  %911 = vmatmul.f32.vlgmr.msra.gmra.mxu2 %v505_v21  ;;  %v406_v20 = vld [vmem:[#allocation2 + $0xa00] sm:$0xff]  ;;  %v423_v21 = vld [vmem:[#allocation2 + $0xa88] sm:$0xff] }
  0xbd   :  { %935 = vmatpush.msrb.mxu0 %v421_v22  ;;  %975 = vmatpush.msrb.mxu2 %v453_v23  ;;  %v438_v22 = vld [vmem:[#allocation2 + $0xb00] sm:$0xff]  ;;  %v455_v23 = vld [vmem:[#allocation2 + $0xb88] sm:$0xff] }
  0xbe   :  { %890 = vmatpush.msra.mxu1 %v358_v24  ;;  %930 = vmatpush.msra.mxu3 %v390_v25  ;;  %v507_v24 = vld.sshfl [vmem:[#allocation1 + $0x20] sm:$0xff pattern:$0x73625140]  ;;  %v509_v25 = vld.sshfl [vmem:[#allocation1 + $0x30] sm:$0xff pattern:$0x73625140] }
  0xbf   :  { %891 = vmatmul.f32.vlgmr.msra.gmra.mxu1 %v504_v29  ;;  %931 = vmatmul.f32.vlgmr.msra.gmra.mxu3 %v506_v30  ;;  %v422_v29 = vld [vmem:[#allocation2 + $0xa80] sm:$0xff] }
  0xc0   :  { %936 = vmatpush.msrb.mxu0 %v420_v33  ;;  %955 = vmatpush.msrb.mxu1 %v437_v34  ;;  %v454_v30 = vld [vmem:[#allocation2 + $0xb80] sm:$0xff]  ;;  %v510_v34 = vld.sshfl [vmem:[#allocation1 + $0x38] sm:$0xff pattern:$0x73625140] }
  0xc1   :  { %976 = vmatpush.msrb.mxu2 %v452_v31  ;;  %995 = vmatpush.msrb.mxu3 %v469_v26  ;;  %v508_v33 = vld.sshfl [vmem:[#allocation1 + $0x28] sm:$0xff pattern:$0x73625140] }
  0xc2   :  { %937 = vmatpush.msrb.mxu0 %v419_v27  ;;  %956 = vmatpush.msrb.mxu1 %v436_v35  ;;  %v1083_v31 = vld [vmem:[#allocation5] ss:$0 sm:$0xff] }
  0xc3   :  { %977 = vmatpush.msrb.mxu2 %v451_v36  ;;  %996 = vmatpush.msrb.mxu3 %v468_v37 }
  0xc4   :  { %938 = vmatpush.msrb.mxu0 %v418_v38  ;;  %957 = vmatpush.msrb.mxu1 %v435_v32 }
  0xc5   :  { %978 = vmatpush.msrb.mxu2 %v450_v28  ;;  %997 = vmatpush.msrb.mxu3 %v467_v39  ;;  %v1031_v28 = vld [vmem:[#allocation7 + $0x78] sm:$0xff]  ;;  %v1030_v39 = vld [vmem:[#allocation7 + $0x70] sm:$0xff] }
  0xc6   :  { %939 = vmatpush.msrb.mxu0 %v417_v40  ;;  %958 = vmatpush.msrb.mxu1 %v434_v41  ;;  %v1029_v40 = vld [vmem:[#allocation7 + $0x68] sm:$0xff] }
  0xc7   :  { %979 = vmatpush.msrb.mxu2 %v449_v42  ;;  %998 = vmatpush.msrb.mxu3 %v466_v43  ;;  %v1028_v43 = vld [vmem:[#allocation7 + $0x60] sm:$0xff] }
  0xc8   :  { %940 = vmatpush.msrb.mxu0 %v416_v44  ;;  %959 = vmatpush.msrb.mxu1 %v433_v45  ;;  %v1027_v44 = vld [vmem:[#allocation7 + $0x58] sm:$0xff] }
  0xc9   :  { %980 = vmatpush.msrb.mxu2 %v448_v46  ;;  %999 = vmatpush.msrb.mxu3 %v465_v47  ;;  %v1026_v47 = vld [vmem:[#allocation7 + $0x50] sm:$0xff] }
  0xca   :  { %941 = vmatpush.msrb.mxu0 %v415_v48  ;;  %960 = vmatpush.msrb.mxu1 %v432_v49  ;;  %v1025_v48 = vld [vmem:[#allocation7 + $0x48] sm:$0xff] }
  0xcb   :  { %981 = vmatpush.msrb.mxu2 %v447_v50  ;;  %1000 = vmatpush.msrb.mxu3 %v464_v51  ;;  %v1024_v51 = vld [vmem:[#allocation7 + $0x40] sm:$0xff] }
  0xcc   :  { %942 = vmatpush.msrb.mxu0 %v414_v52  ;;  %961 = vmatpush.msrb.mxu1 %v431_v53  ;;  %v1023_v52 = vld [vmem:[#allocation7 + $0x38] sm:$0xff] }
  0xcd   :  { %982 = vmatpush.msrb.mxu2 %v446_v54  ;;  %1001 = vmatpush.msrb.mxu3 %v463_v55 }
  0xce   :  { %943 = vmatpush.msrb.mxu0 %v413_v56  ;;  %962 = vmatpush.msrb.mxu1 %v430_v57 }
  0xcf   :  { %983 = vmatpush.msrb.mxu2 %v445_v58  ;;  %1002 = vmatpush.msrb.mxu3 %v462_v59  ;;  %v1022_v59 = vld [vmem:[#allocation7 + $0x30] sm:$0xff] }
  0xd0   :  { %944 = vmatpush.msrb.mxu0 %v412_v60  ;;  %963 = vmatpush.msrb.mxu1 %v429_v61 }
  0xd1   :  { %984 = vmatpush.msrb.mxu2 %v444_v62  ;;  %1003 = vmatpush.msrb.mxu3 %v461_v63  ;;  %v552_v26 = vpop.f32.mrf.mxu0  ;;  %v1021_v62 = vld [vmem:[#allocation7 + $0x28] sm:$0xff] }
  0xd2   :  { %945 = vmatpush.msrb.mxu0 %v411_v0  ;;  %964 = vmatpush.msrb.mxu1 %v428_v1  ;;  %v553_v27 = vadd.f32 %v1083_v31, %v552_v26  ;;  %v1020_v0 = vld [vmem:[#allocation7 + $0x20] sm:$0xff] }
  0xd3   :  { %985 = vmatpush.msrb.mxu2 %v443_v2  ;;  %1004 = vmatpush.msrb.mxu3 %v460_v3  ;;  %v1019_v2 = vld [vmem:[#allocation7 + $0x18] sm:$0xff] }
  0xd4   :  { %946 = vmatpush.msrb.mxu0 %v410_v4  ;;  %965 = vmatpush.msrb.mxu1 %v427_v5  ;;  %v572_v35 = vpop.f32.mrf.mxu1  ;;  %v1018_v5 = vld [vmem:[#allocation7 + $0x10] sm:$0xff] }
  0xd5   :  { %986 = vmatpush.msrb.mxu2 %v442_v6  ;;  %1005 = vmatpush.msrb.mxu3 %v459_v7  ;;  %v573_v36 = vadd.f32 %v572_v35, %v553_v27  ;;  %v1017_v7 = vld [vmem:[#allocation7 + $0x8] sm:$0xff]  ;;  %v1084_v27 = vld [vmem:[#allocation8] ss:$0 sm:$0xff] }
  0xd6   :  { %947 = vmatpush.msrb.mxu0 %v409_v8  ;;  %966 = vmatpush.msrb.mxu1 %v426_v9  ;;  %v1016_v9 = vld [vmem:[#allocation7] sm:$0xff] }
  0xd7   :  { %987 = vmatpush.msrb.mxu2 %v441_v10  ;;  %1006 = vmatpush.msrb.mxu3 %v458_v11  ;;  %v592_v37 = vpop.f32.mrf.mxu2 }
  0xd8   :  { %948 = vmatpush.msrb.mxu0 %v408_v12  ;;  %967 = vmatpush.msrb.mxu1 %v425_v13  ;;  %v593_v38 = vadd.f32 %v592_v37, %v573_v36 }
  0xd9   :  { %988 = vmatpush.msrb.mxu2 %v440_v14  ;;  %1007 = vmatpush.msrb.mxu3 %v457_v15 }
  0xda   :  { %949 = vmatpush.msrb.mxu0 %v407_v16  ;;  %968 = vmatpush.msrb.mxu1 %v424_v17  ;;  %v612_v32 = vpop.f32.mrf.mxu3 }
  0xdb   :  { %989 = vmatpush.msrb.mxu2 %v439_v18  ;;  %1008 = vmatpush.msrb.mxu3 %v456_v19  ;;  %v613_v41 = vadd.f32 %v612_v32, %v593_v38 }
  0xdc   :  { %950 = vmatpush.msrb.mxu0 %v406_v20  ;;  %969 = vmatpush.msrb.mxu1 %v423_v21 }
  0xdd   :  { %990 = vmatpush.msrb.mxu2 %v438_v22  ;;  %1009 = vmatpush.msrb.mxu3 %v455_v23  ;;  %v632_v42 = vpop.f32.mrf.mxu0 }
  0xde   :  { %951 = vmatmul.f32.vlgmr.msrb.gmra.mxu0 %v507_v24  ;;  %991 = vmatmul.f32.vlgmr.msrb.gmra.mxu2 %v509_v25  ;;  %v633_v45 = vadd.f32 %v632_v42, %v613_v41 }
  0xdf   :  { %970 = vmatpush.msrb.mxu1 %v422_v29  ;;  %1010 = vmatpush.msrb.mxu3 %v454_v30 }
  0xe0   :  { %971 = vmatmul.f32.vlgmr.msrb.gmra.mxu1 %v508_v33  ;;  %1011 = vmatmul.f32.vlgmr.msrb.gmra.mxu3 %v510_v34  ;;  %v652_v46 = vpop.f32.mrf.mxu1 }
  0xe1   :  { %1036 = vmatpush.msra.mxu0 %v1031_v28  ;;  %v653_v49 = vadd.f32 %v652_v46, %v633_v45  ;;  %v672_v50 = vpop.f32.mrf.mxu2 }
  0xe3   :  { %1037 = vmatpush.msra.mxu0 %v1030_v39  ;;  %v673_v53 = vadd.f32 %v672_v50, %v653_v49 }
  0xe4   :  { %v692_v54 = vpop.f32.mrf.mxu3 }
  0xe5   :  { %1038 = vmatpush.msra.mxu0 %v1029_v40  ;;  %v693_v56 = vadd.f32 %v692_v54, %v673_v53 }
  0xe7   :  { %1039 = vmatpush.msra.mxu0 %v1028_v43 }
  0xe9   :  { %1040 = vmatpush.msra.mxu0 %v1027_v44 }
  0xeb   :  { %1041 = vmatpush.msra.mxu0 %v1026_v47 }
  0xed   :  { %1042 = vmatpush.msra.mxu0 %v1025_v48 }
  0xef   :  { %1043 = vmatpush.msra.mxu0 %v1024_v51 }
  0xf1   :  { %1044 = vmatpush.msra.mxu0 %v1023_v52 }
  0xf3   :  { %1045 = vmatpush.msra.mxu0 %v1022_v59 }
  0xf5   :  { %v712_v55 = vpop.f32.mrf.mxu0  ;;  %1046 = vmatpush.msra.mxu0 %v1021_v62 }
  0xf6   :  { %v713_v57 = vadd.f32 %v712_v55, %v693_v56 }
  0xf7   :  { %1047 = vmatpush.msra.mxu0 %v1020_v0 }
  0xf8   :  { %v732_v58 = vpop.f32.mrf.mxu1 }
  0xf9   :  { %v733_v61 = vadd.f32 %v732_v58, %v713_v57  ;;  %1048 = vmatpush.msra.mxu0 %v1019_v2 }
  0xfb   :  { %v752_v60 = vpop.f32.mrf.mxu2  ;;  %1049 = vmatpush.msra.mxu0 %v1018_v5 }
  0xfc   :  { %v753_v63 = vadd.f32 %v752_v60, %v733_v61 }
  0xfd   :  { %1050 = vmatpush.msra.mxu0 %v1017_v7 }
  0xfe   :  { %v772_v1 = vpop.f32.mrf.mxu3 }
  0xff   :  { %v773_v4 = vadd.f32 %v772_v1, %v753_v63  ;;  %1051 = vmatpush.msra.mxu0 %v1016_v9 }
 0x117   :  { %v792_v3 = vpop.f32.mrf.mxu0 }
 0x118   :  { %v793_v6 = vadd.f32 %v792_v3, %v773_v4 }
 0x11a   :  { %v812_v8 = vpop.f32.mrf.mxu1 }
 0x11b   :  { %v813_v11 = vadd.f32 %v812_v8, %v793_v6 }
 0x11d   :  { %v832_v10 = vpop.f32.mrf.mxu2 }
 0x11e   :  { %v833_v12 = vadd.f32 %v832_v10, %v813_v11 }
 0x120   :  { %v852_v13 = vpop.f32.mrf.mxu3 }
 0x121   :  { %v853_v15 = vadd.f32 %v852_v13, %v833_v12 }
 0x139   :  { %v872_v14 = vpop.f32.mrf.mxu0 }
 0x13a   :  { %v873_v16 = vadd.f32 %v872_v14, %v853_v15 }
 0x13c   :  { %v892_v17 = vpop.f32.mrf.mxu1 }
 0x13d   :  { %v893_v19 = vadd.f32 %v892_v17, %v873_v16 }
 0x13f   :  { %v912_v18 = vpop.f32.mrf.mxu2 }
 0x140   :  { %v913_v20 = vadd.f32 %v912_v18, %v893_v19 }
 0x142   :  { %v932_v21 = vpop.f32.mrf.mxu3 }
 0x143   :  { %v933_v22 = vadd.f32 %v932_v21, %v913_v20 }
 0x15b   :  { %v952_v23 = vpop.f32.mrf.mxu0 }
 0x15c   :  { %v953_v24 = vadd.f32 %v952_v23, %v933_v22 }
 0x15d   :  { %v972_v25 = vpop.f32.mrf.mxu1 }
 0x15e   :  { %v973_v29 = vadd.f32 %v972_v25, %v953_v24 }
 0x161   :  { %v992_v30 = vpop.f32.mrf.mxu2 }
 0x162   :  { %v993_v33 = vadd.f32 %v992_v30, %v973_v29 }
 0x163   :  { %v1012_v34 = vpop.f32.mrf.mxu3 }
 0x164   :  { %v1013_v31 = vadd.f32 %v1012_v34, %v993_v33 }
 0x166   :  { %v1015_v26 = vmax.f32 %v1013_v31, 0.0 }
 0x168   :  { %1052 = vmatmul.f32.vlgmr.msra.gmra.mxu0 %v1015_v26 }
 0x1e5   :  { %v1053_v35 = vpop.f32.mrf.mxu0 }
 0x1e6   :  { %v1054_v36 = vadd.f32 %v1084_v27, %v1053_v35 }
 0x1e8   :  { %1056 = vst [vmem:[#allocation10] sm:$0x3] %v1054_v36 }
 0x1e9   :  { %1067 = dma.vmem_to_hbm [thread:$0]  %s1063_s23, 32, %s1065_s26, [#allocation4]  }
 0x1ea   :  { %1211 = dma.done.wait [#allocation4], 32  }
 0x1eb   :  { %1212 = vsyncadd [#allocation4], 4294967264 }
 0x1ec   :  { %1072 = vsyncpa [#allocation3], 1 }
 0x1ed   :  { %1073 = vsyncpa [#allocation6], 1 }
 0x1ee   :  { %1074 = vsyncpa [#allocation9], 1 }
 0x1ef   :  { %1075 = vsyncpa [#allocation4], 1 }

</bundles_post_ra>
